<compile_context>
chip_gen: v5e
topology: v5e:2x2
jax: 0.10.0
libtpu: 0.0.40
codegen_flags: <defaults>
</compile_context>

<pallas_src>
import functools

import jax
import jax.numpy as jnp
from jax import lax
from jax.experimental import pallas as pl


# Contract x @ W^T with W stored (out_features, in_features): contract dim 1 of x with dim 1
# of W.  The MXU takes transposed operands for free, so no wrapper-side W.T is needed.
_DN = (((1,), (1,)), ((), ()))


def _mha_fused_kernel(q_in, k_in, v_in,
                      wq, bq, wk, bk, wv, bv, wo, bo,
                      out_ref, avg_ref, *opt_probs,
                      scale, num_heads, head_dim):
    """Whole MHA forward for all batches/heads in a single invocation.

    q_in: (T, B, E), k_in/v_in: (S, B, E), weights: (E, E) torch layout, biases: (1, E).
    out_ref: (T, B, E), avg_ref: (B, T, S), optional probs_ref: (B, H, T, S).
    """
    probs_ref = opt_probs[0] if opt_probs else None
    T, B, E = q_in.shape
    S = k_in.shape[0]
    H, Dh = num_heads, head_dim
    inv_h = 1.0 / H

    # Weights/biases are tiny; load once and reuse across the (static) batch loop.
    wq_v, wk_v, wv_v, wo_v = wq[...], wk[...], wv[...], wo[...]
    bq_v, bk_v, bv_v, bo_v = bq[...], bk[...], bv[...], bo[...]

    # B and H are small compile-time constants here -> fully unrolled static loops.
    for b in range(B):
        xq = q_in[:, b, :]                      # (T, E)
        xk = k_in[:, b, :]                      # (S, E)
        xv = v_in[:, b, :]                      # (S, E)

        # Projections (PyTorch scales q *after* adding the bias).
        q = (lax.dot_general(xq, wq_v, _DN, preferred_element_type=jnp.float32) + bq_v) * scale
        k = lax.dot_general(xk, wk_v, _DN, preferred_element_type=jnp.float32) + bk_v
        v = lax.dot_general(xv, wv_v, _DN, preferred_element_type=jnp.float32) + bv_v

        ctx_heads = []
        avg = jnp.zeros((T, S), jnp.float32)
        for h in range(H):
            sl = slice(h * Dh, (h + 1) * Dh)    # head h occupies lanes [h*Dh, (h+1)*Dh)
            qh, kh, vh = q[:, sl], k[:, sl], v[:, sl]

            # Scores + numerically-stable f32 softmax (exact divide, matches torch softmax).
            s = lax.dot_general(qh, kh, _DN, preferred_element_type=jnp.float32)   # (T, S)
            s = s - jnp.max(s, axis=-1, keepdims=True)
            p = jnp.exp(s)
            p = p / jnp.sum(p, axis=-1, keepdims=True)

            if probs_ref is not None:
                probs_ref[b, h] = p.astype(probs_ref.dtype)
            avg = avg + p

            # Dropout(p=0.0) is the identity -> attn_probs == p.
            ctx_heads.append(jnp.dot(p, vh, preferred_element_type=jnp.float32))   # (T, Dh)

        avg_ref[b] = (avg * inv_h).astype(avg_ref.dtype)

        # Lane-dense (T, E) context, then the fused output projection.
        ctx = jnp.concatenate(ctx_heads, axis=1)                                    # (T, E)
        out = lax.dot_general(ctx, wo_v, _DN, preferred_element_type=jnp.float32) + bo_v
        out_ref[:, b, :] = out.astype(out_ref.dtype)


def multihead_attention(query, key, value, params, num_heads, need_weights=True):
    """query: (T, B, E); key/value: (S, B, E). Returns (attn, avg_weights, attn_weights)."""
    T, B, E = query.shape
    S = key.shape[0]
    H = num_heads
    Dh = E // H
    assert Dh * H == E, "embed_dim must be divisible by num_heads"
    scaling = float(Dh) ** (-0.5)

    out_shapes = [
        jax.ShapeDtypeStruct((T, B, E), query.dtype),   # attn (lane-dense last dim = E)
        jax.ShapeDtypeStruct((B, T, S), jnp.float32),   # head-averaged weights
    ]
    if need_weights:
        out_shapes.append(jax.ShapeDtypeStruct((B, H, T, S), jnp.float32))

    kernel = functools.partial(_mha_fused_kernel, scale=scaling, num_heads=H, head_dim=Dh)

    # Biases as (1, E): reshape of a contiguous array is metadata-only in XLA.
    def b2(b):
        return b.reshape(1, E)

    # Single invocation (no grid, no BlockSpecs): every operand is a full-array VMEM ref.
    results = pl.pallas_call(
        kernel,
        out_shape=tuple(out_shapes),
    )(query, key, value,
      params["q_w"], b2(params["q_b"]),
      params["k_w"], b2(params["k_b"]),
      params["v_w"], b2(params["v_b"]),
      params["out_w"], b2(params["out_b"]))

    if need_weights:
        attn, avg_w, attn_w = results
        return attn, avg_w, attn_w
    attn, avg_w = results
    return attn, avg_w, None


# ------------------------------------ Pure-JAX reference ----------------------------------
def multihead_attention_ref(query, key, value, params, num_heads):
    T, B, E = query.shape
    S = key.shape[0]
    H = num_heads
    Dh = E // H
    scaling = float(Dh) ** (-0.5)

    def lin(x, w, b):
        return x @ w.T + b

    q = lin(query, params["q_w"], params["q_b"]) * scaling
    k = lin(key, params["k_w"], params["k_b"])
    v = lin(value, params["v_w"], params["v_b"])
    q = jnp.transpose(q.reshape(T, B * H, Dh), (1, 0, 2))
    k = jnp.transpose(k.reshape(S, B * H, Dh), (1, 0, 2))
    v = jnp.transpose(v.reshape(S, B * H, Dh), (1, 0, 2))
    s = jnp.einsum("btd,bsd->bts", q, k)
    p = jax.nn.softmax(s.astype(jnp.float32), axis=-1)
    ctx = jnp.einsum("bts,bsd->btd", p, v)
    attn = jnp.transpose(ctx, (1, 0, 2)).reshape(T, B, E)
    attn = lin(attn, params["out_w"], params["out_b"])
    attn_weights = p.reshape(B, H, T, S)
    return attn, jnp.sum(attn_weights, axis=1) / H, attn_weights


# -------------------------------------------- Main ----------------------------------------
if __name__ == "__main__":
    T, S, B, E, H = 8, 8, 2, 32, 4  # tgt_len, src_len, batch, embed_dim, num_heads

    key0 = jax.random.PRNGKey(0)
    ks = jax.random.split(key0, 11)

    def winit(k, shape, scale=0.1):
        return scale * jax.random.normal(k, shape, dtype=jnp.float32)

    params = {
        "q_w": winit(ks[0], (E, E)), "q_b": winit(ks[1], (E,)),
        "k_w": winit(ks[2], (E, E)), "k_b": winit(ks[3], (E,)),
        "v_w": winit(ks[4], (E, E)), "v_b": winit(ks[5], (E,)),
        "out_w": winit(ks[6], (E, E)), "out_b": winit(ks[7], (E,)),
    }

    query = jax.random.normal(ks[8], (T, B, E), dtype=jnp.float32)
    key_ = jax.random.normal(ks[9], (S, B, E), dtype=jnp.float32)
    value = jax.random.normal(ks[10], (S, B, E), dtype=jnp.float32)

    attn, avg_w, attn_w = multihead_attention(query, key_, value, params, H)
    jax.block_until_ready((attn, avg_w, attn_w))

    r_attn, r_avg_w, r_attn_w = multihead_attention_ref(query, key_, value, params, H)
    # Softmax is now exact; remaining tolerance covers MXU-vs-XLA f32 matmul precision.
    assert jnp.allclose(attn, r_attn, rtol=2e-3, atol=2e-3)
    assert jnp.allclose(avg_w, r_avg_w, rtol=2e-3, atol=2e-3)
    assert jnp.allclose(attn_w, r_attn_w, rtol=2e-3, atol=2e-3)

    # Exercise the weights-skipping fast path (no (B,H,T,S) HBM write).
    attn2, avg2, none_w = multihead_attention(query, key_, value, params, H, need_weights=False)
    jax.block_until_ready((attn2, avg2))
    assert none_w is None
    assert jnp.allclose(attn2, attn, rtol=1e-6, atol=1e-6)
    assert jnp.allclose(avg2, avg_w, rtol=1e-6, atol=1e-6)

    print("KERNEL_OK")
</pallas_src>

<mosaic_0001>
module attributes {stable_mosaic.version = 11 : i64} {
  func.func @_mha_fused_kernel(%arg0: memref<8x2x32xf32, #tpu.memory_space<vmem>>, %arg1: memref<8x2x32xf32, #tpu.memory_space<vmem>>, %arg2: memref<8x2x32xf32, #tpu.memory_space<vmem>>, %arg3: memref<32x32xf32, #tpu.memory_space<vmem>>, %arg4: memref<1x32xf32, #tpu.memory_space<vmem>>, %arg5: memref<32x32xf32, #tpu.memory_space<vmem>>, %arg6: memref<1x32xf32, #tpu.memory_space<vmem>>, %arg7: memref<32x32xf32, #tpu.memory_space<vmem>>, %arg8: memref<1x32xf32, #tpu.memory_space<vmem>>, %arg9: memref<32x32xf32, #tpu.memory_space<vmem>>, %arg10: memref<1x32xf32, #tpu.memory_space<vmem>>, %arg11: memref<8x2x32xf32, #tpu.memory_space<vmem>>, %arg12: memref<2x8x8xf32, #tpu.memory_space<vmem>>, %arg13: memref<2x4x8x8xf32, #tpu.memory_space<vmem>>) attributes {dimension_semantics = [], scalar_prefetch = 0 : i64, scratch_operands = 0 : i64, tpu.core_type = #tpu.core_type<tc>} {
    %c0 = arith.constant 0 : index
    %c0_0 = arith.constant 0 : index
    %0 = vector.load %arg3[%c0, %c0_0] : memref<32x32xf32, #tpu.memory_space<vmem>>, vector<32x32xf32>
    %c0_1 = arith.constant 0 : index
    %c0_2 = arith.constant 0 : index
    %1 = vector.load %arg5[%c0_1, %c0_2] : memref<32x32xf32, #tpu.memory_space<vmem>>, vector<32x32xf32>
    %c0_3 = arith.constant 0 : index
    %c0_4 = arith.constant 0 : index
    %2 = vector.load %arg7[%c0_3, %c0_4] : memref<32x32xf32, #tpu.memory_space<vmem>>, vector<32x32xf32>
    %c0_5 = arith.constant 0 : index
    %c0_6 = arith.constant 0 : index
    %3 = vector.load %arg9[%c0_5, %c0_6] : memref<32x32xf32, #tpu.memory_space<vmem>>, vector<32x32xf32>
    %c0_7 = arith.constant 0 : index
    %c0_8 = arith.constant 0 : index
    %4 = vector.load %arg4[%c0_7, %c0_8] : memref<1x32xf32, #tpu.memory_space<vmem>>, vector<1x32xf32>
    %c0_9 = arith.constant 0 : index
    %c0_10 = arith.constant 0 : index
    %5 = vector.load %arg6[%c0_9, %c0_10] : memref<1x32xf32, #tpu.memory_space<vmem>>, vector<1x32xf32>
    %c0_11 = arith.constant 0 : index
    %c0_12 = arith.constant 0 : index
    %6 = vector.load %arg8[%c0_11, %c0_12] : memref<1x32xf32, #tpu.memory_space<vmem>>, vector<1x32xf32>
    %c0_13 = arith.constant 0 : index
    %c0_14 = arith.constant 0 : index
    %7 = vector.load %arg10[%c0_13, %c0_14] : memref<1x32xf32, #tpu.memory_space<vmem>>, vector<1x32xf32>
    %c0_15 = arith.constant 0 : index
    %c0_16 = arith.constant 0 : index
    %c0_17 = arith.constant 0 : index
    %8 = vector.load %arg0[%c0_15, %c0_16, %c0_17] : memref<8x2x32xf32, #tpu.memory_space<vmem>>, vector<8x1x32xf32>
    %9 = vector.shape_cast %8 : vector<8x1x32xf32> to vector<8x32xf32>
    %c0_18 = arith.constant 0 : index
    %c0_19 = arith.constant 0 : index
    %c0_20 = arith.constant 0 : index
    %10 = vector.load %arg1[%c0_18, %c0_19, %c0_20] : memref<8x2x32xf32, #tpu.memory_space<vmem>>, vector<8x1x32xf32>
    %11 = vector.shape_cast %10 : vector<8x1x32xf32> to vector<8x32xf32>
    %c0_21 = arith.constant 0 : index
    %c0_22 = arith.constant 0 : index
    %c0_23 = arith.constant 0 : index
    %12 = vector.load %arg2[%c0_21, %c0_22, %c0_23] : memref<8x2x32xf32, #tpu.memory_space<vmem>>, vector<8x1x32xf32>
    %13 = vector.shape_cast %12 : vector<8x1x32xf32> to vector<8x32xf32>
    %cst = arith.constant dense<0.000000e+00> : vector<8x32xf32>
    %14 = tpu.matmul %9, %0, %cst {dimension_numbers = #tpu.dot_dimension_numbers<[1], [1], [0], [0], [0, 0, 1, 0], [], []>} : vector<8x32xf32>, vector<32x32xf32>, vector<8x32xf32> -> vector<8x32xf32>
    %15 = vector.broadcast %4 : vector<1x32xf32> to vector<8x32xf32>
    %16 = arith.addf %14, %15 : vector<8x32xf32>
    %cst_24 = arith.constant 0.353553385 : f32
    %17 = vector.broadcast %cst_24 : f32 to vector<8x32xf32>
    %18 = arith.mulf %16, %17 : vector<8x32xf32>
    %cst_25 = arith.constant dense<0.000000e+00> : vector<8x32xf32>
    %19 = tpu.matmul %11, %1, %cst_25 {dimension_numbers = #tpu.dot_dimension_numbers<[1], [1], [0], [0], [0, 0, 1, 0], [], []>} : vector<8x32xf32>, vector<32x32xf32>, vector<8x32xf32> -> vector<8x32xf32>
    %20 = vector.broadcast %5 : vector<1x32xf32> to vector<8x32xf32>
    %21 = arith.addf %19, %20 : vector<8x32xf32>
    %cst_26 = arith.constant dense<0.000000e+00> : vector<8x32xf32>
    %22 = tpu.matmul %13, %2, %cst_26 {dimension_numbers = #tpu.dot_dimension_numbers<[1], [1], [0], [0], [0, 0, 1, 0], [], []>} : vector<8x32xf32>, vector<32x32xf32>, vector<8x32xf32> -> vector<8x32xf32>
    %23 = vector.broadcast %6 : vector<1x32xf32> to vector<8x32xf32>
    %24 = arith.addf %22, %23 : vector<8x32xf32>
    %cst_27 = arith.constant 0.000000e+00 : f32
    %25 = vector.broadcast %cst_27 : f32 to vector<8x8xf32>
    %26 = vector.extract_strided_slice %18 {offsets = [0, 0], sizes = [8, 8], strides = [1, 1]} : vector<8x32xf32> to vector<8x8xf32>
    %27 = vector.extract_strided_slice %21 {offsets = [0, 0], sizes = [8, 8], strides = [1, 1]} : vector<8x32xf32> to vector<8x8xf32>
    %28 = vector.extract_strided_slice %24 {offsets = [0, 0], sizes = [8, 8], strides = [1, 1]} : vector<8x32xf32> to vector<8x8xf32>
    %cst_28 = arith.constant dense<0.000000e+00> : vector<8x8xf32>
    %29 = tpu.matmul %26, %27, %cst_28 {dimension_numbers = #tpu.dot_dimension_numbers<[1], [1], [0], [0], [0, 0, 1, 0], [], []>} : vector<8x8xf32>, vector<8x8xf32>, vector<8x8xf32> -> vector<8x8xf32>
    %cst_29 = arith.constant dense<0xFF800000> : vector<8xf32>
    %30 = vector.multi_reduction <maximumf>, %29, %cst_29 [1] : vector<8x8xf32> to vector<8xf32>
    %31 = vector.shape_cast %30 : vector<8xf32> to vector<8x1xf32>
    %32 = vector.broadcast %31 : vector<8x1xf32> to vector<8x8xf32>
    %33 = arith.subf %29, %32 : vector<8x8xf32>
    %34 = math.exp %33 : vector<8x8xf32>
    %cst_30 = arith.constant dense<0.000000e+00> : vector<8xf32>
    %35 = vector.multi_reduction <add>, %34, %cst_30 [1] : vector<8x8xf32> to vector<8xf32>
    %36 = vector.shape_cast %35 : vector<8xf32> to vector<8x1xf32>
    %37 = vector.broadcast %36 : vector<8x1xf32> to vector<8x8xf32>
    %38 = arith.divf %34, %37 : vector<8x8xf32>
    %c0_31 = arith.constant 0 : index
    %c0_32 = arith.constant 0 : index
    %c0_33 = arith.constant 0 : index
    %c0_34 = arith.constant 0 : index
    %39 = vector.load %arg13[%c0_31, %c0_32, %c0_33, %c0_34] : memref<2x4x8x8xf32, #tpu.memory_space<vmem>>, vector<1x1x8x8xf32>
    %40 = vector.shape_cast %39 : vector<1x1x8x8xf32> to vector<8x8xf32>
    %41 = vector.shape_cast %38 : vector<8x8xf32> to vector<1x1x8x8xf32>
    tpu.vector_store %arg13[%c0_31, %c0_32, %c0_33, %c0_34], %41 {strides = array<i32>} : memref<2x4x8x8xf32, #tpu.memory_space<vmem>>, vector<1x1x8x8xf32>,
    %42 = arith.addf %25, %38 : vector<8x8xf32>
    %cst_35 = arith.constant dense<0.000000e+00> : vector<8x8xf32>
    %43 = tpu.matmul %38, %28, %cst_35 {dimension_numbers = #tpu.dot_dimension_numbers<[1], [0], [0], [1], [0, 0, 1, 1], [], []>} : vector<8x8xf32>, vector<8x8xf32>, vector<8x8xf32> -> vector<8x8xf32>
    %44 = vector.extract_strided_slice %18 {offsets = [0, 8], sizes = [8, 8], strides = [1, 1]} : vector<8x32xf32> to vector<8x8xf32>
    %45 = vector.extract_strided_slice %21 {offsets = [0, 8], sizes = [8, 8], strides = [1, 1]} : vector<8x32xf32> to vector<8x8xf32>
    %46 = vector.extract_strided_slice %24 {offsets = [0, 8], sizes = [8, 8], strides = [1, 1]} : vector<8x32xf32> to vector<8x8xf32>
    %cst_36 = arith.constant dense<0.000000e+00> : vector<8x8xf32>
    %47 = tpu.matmul %44, %45, %cst_36 {dimension_numbers = #tpu.dot_dimension_numbers<[1], [1], [0], [0], [0, 0, 1, 0], [], []>} : vector<8x8xf32>, vector<8x8xf32>, vector<8x8xf32> -> vector<8x8xf32>
    %cst_37 = arith.constant dense<0xFF800000> : vector<8xf32>
    %48 = vector.multi_reduction <maximumf>, %47, %cst_37 [1] : vector<8x8xf32> to vector<8xf32>
    %49 = vector.shape_cast %48 : vector<8xf32> to vector<8x1xf32>
    %50 = vector.broadcast %49 : vector<8x1xf32> to vector<8x8xf32>
    %51 = arith.subf %47, %50 : vector<8x8xf32>
    %52 = math.exp %51 : vector<8x8xf32>
    %cst_38 = arith.constant dense<0.000000e+00> : vector<8xf32>
    %53 = vector.multi_reduction <add>, %52, %cst_38 [1] : vector<8x8xf32> to vector<8xf32>
    %54 = vector.shape_cast %53 : vector<8xf32> to vector<8x1xf32>
    %55 = vector.broadcast %54 : vector<8x1xf32> to vector<8x8xf32>
    %56 = arith.divf %52, %55 : vector<8x8xf32>
    %c0_39 = arith.constant 0 : index
    %c1 = arith.constant 1 : index
    %c0_40 = arith.constant 0 : index
    %c0_41 = arith.constant 0 : index
    %57 = vector.load %arg13[%c0_39, %c1, %c0_40, %c0_41] : memref<2x4x8x8xf32, #tpu.memory_space<vmem>>, vector<1x1x8x8xf32>
    %58 = vector.shape_cast %57 : vector<1x1x8x8xf32> to vector<8x8xf32>
    %59 = vector.shape_cast %56 : vector<8x8xf32> to vector<1x1x8x8xf32>
    tpu.vector_store %arg13[%c0_39, %c1, %c0_40, %c0_41], %59 {strides = array<i32>} : memref<2x4x8x8xf32, #tpu.memory_space<vmem>>, vector<1x1x8x8xf32>,
    %60 = arith.addf %42, %56 : vector<8x8xf32>
    %cst_42 = arith.constant dense<0.000000e+00> : vector<8x8xf32>
    %61 = tpu.matmul %56, %46, %cst_42 {dimension_numbers = #tpu.dot_dimension_numbers<[1], [0], [0], [1], [0, 0, 1, 1], [], []>} : vector<8x8xf32>, vector<8x8xf32>, vector<8x8xf32> -> vector<8x8xf32>
    %62 = vector.extract_strided_slice %18 {offsets = [0, 16], sizes = [8, 8], strides = [1, 1]} : vector<8x32xf32> to vector<8x8xf32>
    %63 = vector.extract_strided_slice %21 {offsets = [0, 16], sizes = [8, 8], strides = [1, 1]} : vector<8x32xf32> to vector<8x8xf32>
    %64 = vector.extract_strided_slice %24 {offsets = [0, 16], sizes = [8, 8], strides = [1, 1]} : vector<8x32xf32> to vector<8x8xf32>
    %cst_43 = arith.constant dense<0.000000e+00> : vector<8x8xf32>
    %65 = tpu.matmul %62, %63, %cst_43 {dimension_numbers = #tpu.dot_dimension_numbers<[1], [1], [0], [0], [0, 0, 1, 0], [], []>} : vector<8x8xf32>, vector<8x8xf32>, vector<8x8xf32> -> vector<8x8xf32>
    %cst_44 = arith.constant dense<0xFF800000> : vector<8xf32>
    %66 = vector.multi_reduction <maximumf>, %65, %cst_44 [1] : vector<8x8xf32> to vector<8xf32>
    %67 = vector.shape_cast %66 : vector<8xf32> to vector<8x1xf32>
    %68 = vector.broadcast %67 : vector<8x1xf32> to vector<8x8xf32>
    %69 = arith.subf %65, %68 : vector<8x8xf32>
    %70 = math.exp %69 : vector<8x8xf32>
    %cst_45 = arith.constant dense<0.000000e+00> : vector<8xf32>
    %71 = vector.multi_reduction <add>, %70, %cst_45 [1] : vector<8x8xf32> to vector<8xf32>
    %72 = vector.shape_cast %71 : vector<8xf32> to vector<8x1xf32>
    %73 = vector.broadcast %72 : vector<8x1xf32> to vector<8x8xf32>
    %74 = arith.divf %70, %73 : vector<8x8xf32>
    %c0_46 = arith.constant 0 : index
    %c2 = arith.constant 2 : index
    %c0_47 = arith.constant 0 : index
    %c0_48 = arith.constant 0 : index
    %75 = vector.load %arg13[%c0_46, %c2, %c0_47, %c0_48] : memref<2x4x8x8xf32, #tpu.memory_space<vmem>>, vector<1x1x8x8xf32>
    %76 = vector.shape_cast %75 : vector<1x1x8x8xf32> to vector<8x8xf32>
    %77 = vector.shape_cast %74 : vector<8x8xf32> to vector<1x1x8x8xf32>
    tpu.vector_store %arg13[%c0_46, %c2, %c0_47, %c0_48], %77 {strides = array<i32>} : memref<2x4x8x8xf32, #tpu.memory_space<vmem>>, vector<1x1x8x8xf32>,
    %78 = arith.addf %60, %74 : vector<8x8xf32>
    %cst_49 = arith.constant dense<0.000000e+00> : vector<8x8xf32>
    %79 = tpu.matmul %74, %64, %cst_49 {dimension_numbers = #tpu.dot_dimension_numbers<[1], [0], [0], [1], [0, 0, 1, 1], [], []>} : vector<8x8xf32>, vector<8x8xf32>, vector<8x8xf32> -> vector<8x8xf32>
    %80 = vector.extract_strided_slice %18 {offsets = [0, 24], sizes = [8, 8], strides = [1, 1]} : vector<8x32xf32> to vector<8x8xf32>
    %81 = vector.extract_strided_slice %21 {offsets = [0, 24], sizes = [8, 8], strides = [1, 1]} : vector<8x32xf32> to vector<8x8xf32>
    %82 = vector.extract_strided_slice %24 {offsets = [0, 24], sizes = [8, 8], strides = [1, 1]} : vector<8x32xf32> to vector<8x8xf32>
    %cst_50 = arith.constant dense<0.000000e+00> : vector<8x8xf32>
    %83 = tpu.matmul %80, %81, %cst_50 {dimension_numbers = #tpu.dot_dimension_numbers<[1], [1], [0], [0], [0, 0, 1, 0], [], []>} : vector<8x8xf32>, vector<8x8xf32>, vector<8x8xf32> -> vector<8x8xf32>
    %cst_51 = arith.constant dense<0xFF800000> : vector<8xf32>
    %84 = vector.multi_reduction <maximumf>, %83, %cst_51 [1] : vector<8x8xf32> to vector<8xf32>
    %85 = vector.shape_cast %84 : vector<8xf32> to vector<8x1xf32>
    %86 = vector.broadcast %85 : vector<8x1xf32> to vector<8x8xf32>
    %87 = arith.subf %83, %86 : vector<8x8xf32>
    %88 = math.exp %87 : vector<8x8xf32>
    %cst_52 = arith.constant dense<0.000000e+00> : vector<8xf32>
    %89 = vector.multi_reduction <add>, %88, %cst_52 [1] : vector<8x8xf32> to vector<8xf32>
    %90 = vector.shape_cast %89 : vector<8xf32> to vector<8x1xf32>
    %91 = vector.broadcast %90 : vector<8x1xf32> to vector<8x8xf32>
    %92 = arith.divf %88, %91 : vector<8x8xf32>
    %c0_53 = arith.constant 0 : index
    %c3 = arith.constant 3 : index
    %c0_54 = arith.constant 0 : index
    %c0_55 = arith.constant 0 : index
    %93 = vector.load %arg13[%c0_53, %c3, %c0_54, %c0_55] : memref<2x4x8x8xf32, #tpu.memory_space<vmem>>, vector<1x1x8x8xf32>
    %94 = vector.shape_cast %93 : vector<1x1x8x8xf32> to vector<8x8xf32>
    %95 = vector.shape_cast %92 : vector<8x8xf32> to vector<1x1x8x8xf32>
    tpu.vector_store %arg13[%c0_53, %c3, %c0_54, %c0_55], %95 {strides = array<i32>} : memref<2x4x8x8xf32, #tpu.memory_space<vmem>>, vector<1x1x8x8xf32>,
    %96 = arith.addf %78, %92 : vector<8x8xf32>
    %cst_56 = arith.constant dense<0.000000e+00> : vector<8x8xf32>
    %97 = tpu.matmul %92, %82, %cst_56 {dimension_numbers = #tpu.dot_dimension_numbers<[1], [0], [0], [1], [0, 0, 1, 1], [], []>} : vector<8x8xf32>, vector<8x8xf32>, vector<8x8xf32> -> vector<8x8xf32>
    %cst_57 = arith.constant 2.500000e-01 : f32
    %98 = vector.broadcast %cst_57 : f32 to vector<8x8xf32>
    %99 = arith.mulf %96, %98 : vector<8x8xf32>
    %c0_58 = arith.constant 0 : index
    %c0_59 = arith.constant 0 : index
    %c0_60 = arith.constant 0 : index
    %100 = vector.load %arg12[%c0_58, %c0_59, %c0_60] : memref<2x8x8xf32, #tpu.memory_space<vmem>>, vector<1x8x8xf32>
    %101 = vector.shape_cast %100 : vector<1x8x8xf32> to vector<8x8xf32>
    %102 = vector.shape_cast %99 : vector<8x8xf32> to vector<1x8x8xf32>
    tpu.vector_store %arg12[%c0_58, %c0_59, %c0_60], %102 {strides = array<i32>} : memref<2x8x8xf32, #tpu.memory_space<vmem>>, vector<1x8x8xf32>,
    %103 = tpu.concatenate %43, %61, %79, %97 in 1 : vector<8x8xf32>, vector<8x8xf32>, vector<8x8xf32>, vector<8x8xf32> -> vector<8x32xf32>
    %cst_61 = arith.constant dense<0.000000e+00> : vector<8x32xf32>
    %104 = tpu.matmul %103, %3, %cst_61 {dimension_numbers = #tpu.dot_dimension_numbers<[1], [1], [0], [0], [0, 0, 1, 0], [], []>} : vector<8x32xf32>, vector<32x32xf32>, vector<8x32xf32> -> vector<8x32xf32>
    %105 = vector.broadcast %7 : vector<1x32xf32> to vector<8x32xf32>
    %106 = arith.addf %104, %105 : vector<8x32xf32>
    %c0_62 = arith.constant 0 : index
    %c0_63 = arith.constant 0 : index
    %c0_64 = arith.constant 0 : index
    %107 = vector.load %arg11[%c0_62, %c0_63, %c0_64] : memref<8x2x32xf32, #tpu.memory_space<vmem>>, vector<8x1x32xf32>
    %108 = vector.shape_cast %107 : vector<8x1x32xf32> to vector<8x32xf32>
    %109 = vector.shape_cast %106 : vector<8x32xf32> to vector<8x1x32xf32>
    tpu.vector_store %arg11[%c0_62, %c0_63, %c0_64], %109 {strides = array<i32>} : memref<8x2x32xf32, #tpu.memory_space<vmem>>, vector<8x1x32xf32>,
    %c0_65 = arith.constant 0 : index
    %c1_66 = arith.constant 1 : index
    %c0_67 = arith.constant 0 : index
    %110 = vector.load %arg0[%c0_65, %c1_66, %c0_67] : memref<8x2x32xf32, #tpu.memory_space<vmem>>, vector<8x1x32xf32>
    %111 = vector.shape_cast %110 : vector<8x1x32xf32> to vector<8x32xf32>
    %c0_68 = arith.constant 0 : index
    %c1_69 = arith.constant 1 : index
    %c0_70 = arith.constant 0 : index
    %112 = vector.load %arg1[%c0_68, %c1_69, %c0_70] : memref<8x2x32xf32, #tpu.memory_space<vmem>>, vector<8x1x32xf32>
    %113 = vector.shape_cast %112 : vector<8x1x32xf32> to vector<8x32xf32>
    %c0_71 = arith.constant 0 : index
    %c1_72 = arith.constant 1 : index
    %c0_73 = arith.constant 0 : index
    %114 = vector.load %arg2[%c0_71, %c1_72, %c0_73] : memref<8x2x32xf32, #tpu.memory_space<vmem>>, vector<8x1x32xf32>
    %115 = vector.shape_cast %114 : vector<8x1x32xf32> to vector<8x32xf32>
    %cst_74 = arith.constant dense<0.000000e+00> : vector<8x32xf32>
    %116 = tpu.matmul %111, %0, %cst_74 {dimension_numbers = #tpu.dot_dimension_numbers<[1], [1], [0], [0], [0, 0, 1, 0], [], []>} : vector<8x32xf32>, vector<32x32xf32>, vector<8x32xf32> -> vector<8x32xf32>
    %117 = vector.broadcast %4 : vector<1x32xf32> to vector<8x32xf32>
    %118 = arith.addf %116, %117 : vector<8x32xf32>
    %cst_75 = arith.constant 0.353553385 : f32
    %119 = vector.broadcast %cst_75 : f32 to vector<8x32xf32>
    %120 = arith.mulf %118, %119 : vector<8x32xf32>
    %cst_76 = arith.constant dense<0.000000e+00> : vector<8x32xf32>
    %121 = tpu.matmul %113, %1, %cst_76 {dimension_numbers = #tpu.dot_dimension_numbers<[1], [1], [0], [0], [0, 0, 1, 0], [], []>} : vector<8x32xf32>, vector<32x32xf32>, vector<8x32xf32> -> vector<8x32xf32>
    %122 = vector.broadcast %5 : vector<1x32xf32> to vector<8x32xf32>
    %123 = arith.addf %121, %122 : vector<8x32xf32>
    %cst_77 = arith.constant dense<0.000000e+00> : vector<8x32xf32>
    %124 = tpu.matmul %115, %2, %cst_77 {dimension_numbers = #tpu.dot_dimension_numbers<[1], [1], [0], [0], [0, 0, 1, 0], [], []>} : vector<8x32xf32>, vector<32x32xf32>, vector<8x32xf32> -> vector<8x32xf32>
    %125 = vector.broadcast %6 : vector<1x32xf32> to vector<8x32xf32>
    %126 = arith.addf %124, %125 : vector<8x32xf32>
    %cst_78 = arith.constant 0.000000e+00 : f32
    %127 = vector.broadcast %cst_78 : f32 to vector<8x8xf32>
    %128 = vector.extract_strided_slice %120 {offsets = [0, 0], sizes = [8, 8], strides = [1, 1]} : vector<8x32xf32> to vector<8x8xf32>
    %129 = vector.extract_strided_slice %123 {offsets = [0, 0], sizes = [8, 8], strides = [1, 1]} : vector<8x32xf32> to vector<8x8xf32>
    %130 = vector.extract_strided_slice %126 {offsets = [0, 0], sizes = [8, 8], strides = [1, 1]} : vector<8x32xf32> to vector<8x8xf32>
    %cst_79 = arith.constant dense<0.000000e+00> : vector<8x8xf32>
    %131 = tpu.matmul %128, %129, %cst_79 {dimension_numbers = #tpu.dot_dimension_numbers<[1], [1], [0], [0], [0, 0, 1, 0], [], []>} : vector<8x8xf32>, vector<8x8xf32>, vector<8x8xf32> -> vector<8x8xf32>
    %cst_80 = arith.constant dense<0xFF800000> : vector<8xf32>
    %132 = vector.multi_reduction <maximumf>, %131, %cst_80 [1] : vector<8x8xf32> to vector<8xf32>
    %133 = vector.shape_cast %132 : vector<8xf32> to vector<8x1xf32>
    %134 = vector.broadcast %133 : vector<8x1xf32> to vector<8x8xf32>
    %135 = arith.subf %131, %134 : vector<8x8xf32>
    %136 = math.exp %135 : vector<8x8xf32>
    %cst_81 = arith.constant dense<0.000000e+00> : vector<8xf32>
    %137 = vector.multi_reduction <add>, %136, %cst_81 [1] : vector<8x8xf32> to vector<8xf32>
    %138 = vector.shape_cast %137 : vector<8xf32> to vector<8x1xf32>
    %139 = vector.broadcast %138 : vector<8x1xf32> to vector<8x8xf32>
    %140 = arith.divf %136, %139 : vector<8x8xf32>
    %c1_82 = arith.constant 1 : index
    %c0_83 = arith.constant 0 : index
    %c0_84 = arith.constant 0 : index
    %c0_85 = arith.constant 0 : index
    %141 = vector.load %arg13[%c1_82, %c0_83, %c0_84, %c0_85] : memref<2x4x8x8xf32, #tpu.memory_space<vmem>>, vector<1x1x8x8xf32>
    %142 = vector.shape_cast %141 : vector<1x1x8x8xf32> to vector<8x8xf32>
    %143 = vector.shape_cast %140 : vector<8x8xf32> to vector<1x1x8x8xf32>
    tpu.vector_store %arg13[%c1_82, %c0_83, %c0_84, %c0_85], %143 {strides = array<i32>} : memref<2x4x8x8xf32, #tpu.memory_space<vmem>>, vector<1x1x8x8xf32>,
    %144 = arith.addf %127, %140 : vector<8x8xf32>
    %cst_86 = arith.constant dense<0.000000e+00> : vector<8x8xf32>
    %145 = tpu.matmul %140, %130, %cst_86 {dimension_numbers = #tpu.dot_dimension_numbers<[1], [0], [0], [1], [0, 0, 1, 1], [], []>} : vector<8x8xf32>, vector<8x8xf32>, vector<8x8xf32> -> vector<8x8xf32>
    %146 = vector.extract_strided_slice %120 {offsets = [0, 8], sizes = [8, 8], strides = [1, 1]} : vector<8x32xf32> to vector<8x8xf32>
    %147 = vector.extract_strided_slice %123 {offsets = [0, 8], sizes = [8, 8], strides = [1, 1]} : vector<8x32xf32> to vector<8x8xf32>
    %148 = vector.extract_strided_slice %126 {offsets = [0, 8], sizes = [8, 8], strides = [1, 1]} : vector<8x32xf32> to vector<8x8xf32>
    %cst_87 = arith.constant dense<0.000000e+00> : vector<8x8xf32>
    %149 = tpu.matmul %146, %147, %cst_87 {dimension_numbers = #tpu.dot_dimension_numbers<[1], [1], [0], [0], [0, 0, 1, 0], [], []>} : vector<8x8xf32>, vector<8x8xf32>, vector<8x8xf32> -> vector<8x8xf32>
    %cst_88 = arith.constant dense<0xFF800000> : vector<8xf32>
    %150 = vector.multi_reduction <maximumf>, %149, %cst_88 [1] : vector<8x8xf32> to vector<8xf32>
    %151 = vector.shape_cast %150 : vector<8xf32> to vector<8x1xf32>
    %152 = vector.broadcast %151 : vector<8x1xf32> to vector<8x8xf32>
    %153 = arith.subf %149, %152 : vector<8x8xf32>
    %154 = math.exp %153 : vector<8x8xf32>
    %cst_89 = arith.constant dense<0.000000e+00> : vector<8xf32>
    %155 = vector.multi_reduction <add>, %154, %cst_89 [1] : vector<8x8xf32> to vector<8xf32>
    %156 = vector.shape_cast %155 : vector<8xf32> to vector<8x1xf32>
    %157 = vector.broadcast %156 : vector<8x1xf32> to vector<8x8xf32>
    %158 = arith.divf %154, %157 : vector<8x8xf32>
    %c1_90 = arith.constant 1 : index
    %c1_91 = arith.constant 1 : index
    %c0_92 = arith.constant 0 : index
    %c0_93 = arith.constant 0 : index
    %159 = vector.load %arg13[%c1_90, %c1_91, %c0_92, %c0_93] : memref<2x4x8x8xf32, #tpu.memory_space<vmem>>, vector<1x1x8x8xf32>
    %160 = vector.shape_cast %159 : vector<1x1x8x8xf32> to vector<8x8xf32>
    %161 = vector.shape_cast %158 : vector<8x8xf32> to vector<1x1x8x8xf32>
    tpu.vector_store %arg13[%c1_90, %c1_91, %c0_92, %c0_93], %161 {strides = array<i32>} : memref<2x4x8x8xf32, #tpu.memory_space<vmem>>, vector<1x1x8x8xf32>,
    %162 = arith.addf %144, %158 : vector<8x8xf32>
    %cst_94 = arith.constant dense<0.000000e+00> : vector<8x8xf32>
    %163 = tpu.matmul %158, %148, %cst_94 {dimension_numbers = #tpu.dot_dimension_numbers<[1], [0], [0], [1], [0, 0, 1, 1], [], []>} : vector<8x8xf32>, vector<8x8xf32>, vector<8x8xf32> -> vector<8x8xf32>
    %164 = vector.extract_strided_slice %120 {offsets = [0, 16], sizes = [8, 8], strides = [1, 1]} : vector<8x32xf32> to vector<8x8xf32>
    %165 = vector.extract_strided_slice %123 {offsets = [0, 16], sizes = [8, 8], strides = [1, 1]} : vector<8x32xf32> to vector<8x8xf32>
    %166 = vector.extract_strided_slice %126 {offsets = [0, 16], sizes = [8, 8], strides = [1, 1]} : vector<8x32xf32> to vector<8x8xf32>
    %cst_95 = arith.constant dense<0.000000e+00> : vector<8x8xf32>
    %167 = tpu.matmul %164, %165, %cst_95 {dimension_numbers = #tpu.dot_dimension_numbers<[1], [1], [0], [0], [0, 0, 1, 0], [], []>} : vector<8x8xf32>, vector<8x8xf32>, vector<8x8xf32> -> vector<8x8xf32>
    %cst_96 = arith.constant dense<0xFF800000> : vector<8xf32>
    %168 = vector.multi_reduction <maximumf>, %167, %cst_96 [1] : vector<8x8xf32> to vector<8xf32>
    %169 = vector.shape_cast %168 : vector<8xf32> to vector<8x1xf32>
    %170 = vector.broadcast %169 : vector<8x1xf32> to vector<8x8xf32>
    %171 = arith.subf %167, %170 : vector<8x8xf32>
    %172 = math.exp %171 : vector<8x8xf32>
    %cst_97 = arith.constant dense<0.000000e+00> : vector<8xf32>
    %173 = vector.multi_reduction <add>, %172, %cst_97 [1] : vector<8x8xf32> to vector<8xf32>
    %174 = vector.shape_cast %173 : vector<8xf32> to vector<8x1xf32>
    %175 = vector.broadcast %174 : vector<8x1xf32> to vector<8x8xf32>
    %176 = arith.divf %172, %175 : vector<8x8xf32>
    %c1_98 = arith.constant 1 : index
    %c2_99 = arith.constant 2 : index
    %c0_100 = arith.constant 0 : index
    %c0_101 = arith.constant 0 : index
    %177 = vector.load %arg13[%c1_98, %c2_99, %c0_100, %c0_101] : memref<2x4x8x8xf32, #tpu.memory_space<vmem>>, vector<1x1x8x8xf32>
    %178 = vector.shape_cast %177 : vector<1x1x8x8xf32> to vector<8x8xf32>
    %179 = vector.shape_cast %176 : vector<8x8xf32> to vector<1x1x8x8xf32>
    tpu.vector_store %arg13[%c1_98, %c2_99, %c0_100, %c0_101], %179 {strides = array<i32>} : memref<2x4x8x8xf32, #tpu.memory_space<vmem>>, vector<1x1x8x8xf32>,
    %180 = arith.addf %162, %176 : vector<8x8xf32>
    %cst_102 = arith.constant dense<0.000000e+00> : vector<8x8xf32>
    %181 = tpu.matmul %176, %166, %cst_102 {dimension_numbers = #tpu.dot_dimension_numbers<[1], [0], [0], [1], [0, 0, 1, 1], [], []>} : vector<8x8xf32>, vector<8x8xf32>, vector<8x8xf32> -> vector<8x8xf32>
    %182 = vector.extract_strided_slice %120 {offsets = [0, 24], sizes = [8, 8], strides = [1, 1]} : vector<8x32xf32> to vector<8x8xf32>
    %183 = vector.extract_strided_slice %123 {offsets = [0, 24], sizes = [8, 8], strides = [1, 1]} : vector<8x32xf32> to vector<8x8xf32>
    %184 = vector.extract_strided_slice %126 {offsets = [0, 24], sizes = [8, 8], strides = [1, 1]} : vector<8x32xf32> to vector<8x8xf32>
    %cst_103 = arith.constant dense<0.000000e+00> : vector<8x8xf32>
    %185 = tpu.matmul %182, %183, %cst_103 {dimension_numbers = #tpu.dot_dimension_numbers<[1], [1], [0], [0], [0, 0, 1, 0], [], []>} : vector<8x8xf32>, vector<8x8xf32>, vector<8x8xf32> -> vector<8x8xf32>
    %cst_104 = arith.constant dense<0xFF800000> : vector<8xf32>
    %186 = vector.multi_reduction <maximumf>, %185, %cst_104 [1] : vector<8x8xf32> to vector<8xf32>
    %187 = vector.shape_cast %186 : vector<8xf32> to vector<8x1xf32>
    %188 = vector.broadcast %187 : vector<8x1xf32> to vector<8x8xf32>
    %189 = arith.subf %185, %188 : vector<8x8xf32>
    %190 = math.exp %189 : vector<8x8xf32>
    %cst_105 = arith.constant dense<0.000000e+00> : vector<8xf32>
    %191 = vector.multi_reduction <add>, %190, %cst_105 [1] : vector<8x8xf32> to vector<8xf32>
    %192 = vector.shape_cast %191 : vector<8xf32> to vector<8x1xf32>
    %193 = vector.broadcast %192 : vector<8x1xf32> to vector<8x8xf32>
    %194 = arith.divf %190, %193 : vector<8x8xf32>
    %c1_106 = arith.constant 1 : index
    %c3_107 = arith.constant 3 : index
    %c0_108 = arith.constant 0 : index
    %c0_109 = arith.constant 0 : index
    %195 = vector.load %arg13[%c1_106, %c3_107, %c0_108, %c0_109] : memref<2x4x8x8xf32, #tpu.memory_space<vmem>>, vector<1x1x8x8xf32>
    %196 = vector.shape_cast %195 : vector<1x1x8x8xf32> to vector<8x8xf32>
    %197 = vector.shape_cast %194 : vector<8x8xf32> to vector<1x1x8x8xf32>
    tpu.vector_store %arg13[%c1_106, %c3_107, %c0_108, %c0_109], %197 {strides = array<i32>} : memref<2x4x8x8xf32, #tpu.memory_space<vmem>>, vector<1x1x8x8xf32>,
    %198 = arith.addf %180, %194 : vector<8x8xf32>
    %cst_110 = arith.constant dense<0.000000e+00> : vector<8x8xf32>
    %199 = tpu.matmul %194, %184, %cst_110 {dimension_numbers = #tpu.dot_dimension_numbers<[1], [0], [0], [1], [0, 0, 1, 1], [], []>} : vector<8x8xf32>, vector<8x8xf32>, vector<8x8xf32> -> vector<8x8xf32>
    %cst_111 = arith.constant 2.500000e-01 : f32
    %200 = vector.broadcast %cst_111 : f32 to vector<8x8xf32>
    %201 = arith.mulf %198, %200 : vector<8x8xf32>
    %c1_112 = arith.constant 1 : index
    %c0_113 = arith.constant 0 : index
    %c0_114 = arith.constant 0 : index
    %202 = vector.load %arg12[%c1_112, %c0_113, %c0_114] : memref<2x8x8xf32, #tpu.memory_space<vmem>>, vector<1x8x8xf32>
    %203 = vector.shape_cast %202 : vector<1x8x8xf32> to vector<8x8xf32>
    %204 = vector.shape_cast %201 : vector<8x8xf32> to vector<1x8x8xf32>
    tpu.vector_store %arg12[%c1_112, %c0_113, %c0_114], %204 {strides = array<i32>} : memref<2x8x8xf32, #tpu.memory_space<vmem>>, vector<1x8x8xf32>,
    %205 = tpu.concatenate %145, %163, %181, %199 in 1 : vector<8x8xf32>, vector<8x8xf32>, vector<8x8xf32>, vector<8x8xf32> -> vector<8x32xf32>
    %cst_115 = arith.constant dense<0.000000e+00> : vector<8x32xf32>
    %206 = tpu.matmul %205, %3, %cst_115 {dimension_numbers = #tpu.dot_dimension_numbers<[1], [1], [0], [0], [0, 0, 1, 0], [], []>} : vector<8x32xf32>, vector<32x32xf32>, vector<8x32xf32> -> vector<8x32xf32>
    %207 = vector.broadcast %7 : vector<1x32xf32> to vector<8x32xf32>
    %208 = arith.addf %206, %207 : vector<8x32xf32>
    %c0_116 = arith.constant 0 : index
    %c1_117 = arith.constant 1 : index
    %c0_118 = arith.constant 0 : index
    %209 = vector.load %arg11[%c0_116, %c1_117, %c0_118] : memref<8x2x32xf32, #tpu.memory_space<vmem>>, vector<8x1x32xf32>
    %210 = vector.shape_cast %209 : vector<8x1x32xf32> to vector<8x32xf32>
    %211 = vector.shape_cast %208 : vector<8x32xf32> to vector<8x1x32xf32>
    tpu.vector_store %arg11[%c0_116, %c1_117, %c0_118], %211 {strides = array<i32>} : memref<8x2x32xf32, #tpu.memory_space<vmem>>, vector<8x1x32xf32>,
    return
  }
}

</mosaic_0001>

<bundles_post_ra>
// kernel: tpu_custom_call.1
= control target key start
LH: loop header
LB: loop body
LE: loop exit
PB: predicated region body
PF: predicated region fallthrough
CT: control target
= control target key end

     0   :  { %19 = vsyncpa [#allocation3], 0  ;;  %s2194_s0 = inlined_call_operand.hbm [shape: f32[8,2,32], index: 0, kind: input, shape index: {}]   ;;  %s2195_s1 = inlined_call_operand.hbm [shape: f32[8,2,32], index: 1, kind: input, shape index: {}]   ;;  %s2196_s2 = inlined_call_operand.hbm [shape: f32[8,2,32], index: 2, kind: input, shape index: {}]   ;;  %s2197_s3 = inlined_call_operand.hbm [shape: f32[32,32], index: 3, kind: input, shape index: {}]   ;;  %s2198_s4 = inlined_call_operand.vmem [shape: f32[1,32], index: 4, kind: input, shape index: {}]   ;;  %s2199_s5 = inlined_call_operand.hbm [shape: f32[32,32], index: 5, kind: input, shape index: {}]   ;;  %s2200_s6 = inlined_call_operand.vmem [shape: f32[1,32], index: 6, kind: input, shape index: {}]   ;;  %s2201_s7 = inlined_call_operand.hbm [shape: f32[32,32], index: 7, kind: input, shape index: {}]   ;;  %s2202_s8 = inlined_call_operand.vmem [shape: f32[1,32], index: 8, kind: input, shape index: {}]   ;;  %s2203_s9 = inlined_call_operand.hbm [shape: f32[32,32], index: 9, kind: input, shape index: {}]   ;;  %s2204_s10 = inlined_call_operand.vmem [shape: f32[1,32], index: 10, kind: input, shape index: {}]   ;;  %s2205_s11 = inlined_call_operand.hbm [shape: f32[8,2,32], index: 11, kind: output, shape index: {0}]   ;;  %s2206_s12 = inlined_call_operand.hbm [shape: f32[2,8,8], index: 12, kind: output, shape index: {1}]   ;;  %s2207_s13 = inlined_call_operand.hbm [shape: f32[2,4,8,8], index: 13, kind: output, shape index: {2}]  }
   0x1   :  { %20 = vsyncpa [#allocation6], 0 }
   0x2   :  { %21 = vsyncpa [#allocation9], 0 }
   0x3   :  { %22 = vsyncpa [#allocation12], 0 }
   0x4   :  { %23 = vsyncpa [#allocation4], 0 }
   0x5   :  { %24 = vsyncpa [#allocation16], 0  ;;  %s42_s27 = sshll.u32 %s2195_s1, 4  ;;  %s1752_s28 = smov [#allocation5]   ;;  %s43_s27 = int_to_ptr.hbm [resolvable:$true] %s42_s27 }
   0x6   :  { %s44_s29 = sshll.u32 %s1752_s28, 4  ;;  %s68_s15 = sshll.u32 %s2197_s3, 4  ;;  %s45_s29 = int_to_ptr.vmem [resolvable:$true] %s44_s29  ;;  %s69_s15 = int_to_ptr.hbm [resolvable:$true] %s68_s15 }
   0x7   :  { %s1753_s16 = smov 32   ;;  %s1754_s17 = smov 2  }
   0x8   :  { %50 = dma.hbm_to_vmem [thread:$0]  %s43_s27, 256, %s45_s29, [#allocation6], %s1753_s16, %s1753_s16, %s1754_s17  }
   0x9   :  { %s1755_s18 = smov [#allocation8]   ;;  %s1756_s20 = smov 128  }
   0xa   :  { %s70_s19 = sshll.u32 %s1755_s18, 4  ;;  %s1757_s1 = smov 8   ;;  %s71_s19 = int_to_ptr.vmem [resolvable:$true] %s70_s19 }
   0xb   :  { %76 = dma.hbm_to_vmem [thread:$0]  %s69_s15, 512, %s71_s19, [#allocation9], %s1756_s20, %s1756_s20, %s1757_s1  }
   0xc   :  { %s98_s3 = sshll.u32 %s2201_s7, 4  ;;  %s1758_s23 = smov [#allocation11]   ;;  %s99_s3 = int_to_ptr.hbm [resolvable:$true] %s98_s3 }
   0xd   :  { %s100_s24 = sshll.u32 %s1758_s23, 4  ;;  %s29_s27 = sshll.u32 %s2194_s0, 4  ;;  %s101_s24 = int_to_ptr.vmem [resolvable:$true] %s100_s24  ;;  %s30_s27 = int_to_ptr.hbm [resolvable:$true] %s29_s27 }
   0xe   :  { %106 = dma.hbm_to_vmem [thread:$0]  %s99_s3, 512, %s101_s24, [#allocation12], %s1756_s20, %s1756_s20, %s1757_s1  }
   0xf   :  { %s1759_s28 = smov [#allocation2]   ;;  %s55_s15 = sshll.u32 %s2196_s2, 4  ;;  %s56_s15 = int_to_ptr.hbm [resolvable:$true] %s55_s15 }
  0x10   :  { %s31_s29 = sshll.u32 %s1759_s28, 4  ;;  %s83_s0 = sshll.u32 %s2199_s5, 4  ;;  %s32_s29 = int_to_ptr.vmem [resolvable:$true] %s31_s29  ;;  %s84_s0 = int_to_ptr.hbm [resolvable:$true] %s83_s0 }
  0x11   :  { %37 = dma.hbm_to_vmem [thread:$0]  %s30_s27, 256, %s32_s29, [#allocation3], %s1753_s16, %s1753_s16, %s1754_s17  }
  0x12   :  { %s1760_s19 = smov [#allocation7]   ;;  %s1761_s22 = smov [#allocation10]  }
  0x13   :  { %s57_s21 = sshll.u32 %s1760_s19, 4  ;;  %s85_s2 = sshll.u32 %s1761_s22, 4  ;;  %s58_s21 = int_to_ptr.vmem [resolvable:$true] %s57_s21  ;;  %s86_s2 = int_to_ptr.vmem [resolvable:$true] %s85_s2 }
  0x14   :  { %63 = dma.hbm_to_vmem [thread:$0]  %s56_s15, 256, %s58_s21, [#allocation6], %s1753_s16, %s1753_s16, %s1754_s17  }
  0x15   :  { %s113_s24 = sshll.u32 %s2203_s9, 4  ;;  %s1762_s5 = smov [#allocation13]   ;;  %s114_s24 = int_to_ptr.hbm [resolvable:$true] %s113_s24 }
  0x16   :  { %91 = dma.hbm_to_vmem [thread:$0]  %s84_s0, 512, %s86_s2, [#allocation9], %s1756_s20, %s1756_s20, %s1757_s1  }
  0x17   :  { %s115_s25 = sshll.u32 %s1762_s5, 4  ;;  %s116_s25 = int_to_ptr.vmem [resolvable:$true] %s115_s25 }
  0x18   :  { %121 = dma.hbm_to_vmem [thread:$0]  %s114_s24, 512, %s116_s25, [#allocation12], %s1756_s20, %s1756_s20, %s1757_s1  }
  0x19   :  { %1740 = dma.done.wait [#allocation3], 256  }
  0x1a   :  { %1741 = vsyncadd [#allocation3], 4294967040 }
  0x1b   :  { %1742 = dma.done.wait [#allocation6], 512  }
  0x1c   :  { %1743 = vsyncadd [#allocation6], 4294966784 }
  0x1d   :  { %1744 = dma.done.wait [#allocation9], 1024  }
  0x1e   :  { %1745 = vsyncadd [#allocation9], 4294966272 }
  0x1f   :  { %1746 = dma.done.wait [#allocation12], 1024  }
  0x20   :  { %1747 = vsyncadd [#allocation12], 4294966272  ;;  %vm228_vm0 = vcmask 261120   ;;  %v1883_v0 = vld [vmem:[#allocation8 + $0x18] sm:$0xff]  ;;  %vm208_vm1 = vcmask 1041409   ;;  %vm211_vm2 = vcmask 1042434  }
  0x21   :  { %v1885_v1 = vld [vmem:[#allocation10 + $0x18] sm:$0xff]  ;;  %1381 = vmatpush.xpose.msk.msra.mxu0 %vm228_vm0, %v1883_v0  ;;  %vm214_vm3 = vcmask 1043459   ;;  %vm217_vm4 = vcmask 1044484   ;;  %v1891_v2 = vld [vmem:[#allocation8 + $0x10] sm:$0xff]  ;;  %vm220_vm5 = vcmask 1045509   ;;  %vm223_vm6 = vcmask 1046534  }
  0x22   :  { %1386 = vmatpush.xpose.msk.msra.mxu1 %vm228_vm0, %v1885_v1  ;;  %v1893_v3 = vld [vmem:[#allocation10 + $0x10] sm:$0xff]  ;;  %v1895_v8 = vld [vmem:[#allocation8 + $0x8] sm:$0xff]  ;;  %v176_v10 = vld [vmem:[#allocation2 + $0x8] sm:$0x1]  ;;  %vm226_vm7 = vcmask 1047559   ;;  %vm382_vm8 = vcmask 64512  }
  0x23   :  { %v172_v4 = vld [vmem:[#allocation2] sm:$0x1]  ;;  %v173_v5 = vld [vmem:[#allocation2 + $0x2] sm:$0x1]  ;;  %v174_v6 = vld [vmem:[#allocation2 + $0x4] sm:$0x1] }
  0x24   :  { %v175_v7 = vld [vmem:[#allocation2 + $0x6] sm:$0x1]  ;;  %v1897_v9 = vld [vmem:[#allocation10 + $0x8] sm:$0xff]  ;;  %v177_v11 = vld [vmem:[#allocation2 + $0xa] sm:$0x1]  ;;  %v207_v14 = vrot.slane %v173_v5, 7 }
  0x25   :  { %v178_v12 = vld [vmem:[#allocation2 + $0xc] sm:$0x1]  ;;  %1382 = vmatpush.xpose.msk.msra.mxu0 %vm228_vm0, %v1891_v2  ;;  %v179_v13 = vld [vmem:[#allocation2 + $0xe] sm:$0x1]  ;;  %v210_v15 = vrot.slane %v174_v6, 6  ;;  %v213_v16 = vrot.slane %v175_v7, 5 }
  0x26   :  { %1387 = vmatpush.xpose.msk.msra.mxu1 %vm228_vm0, %v1893_v3  ;;  %v216_v17 = vrot.slane %v176_v10, 4  ;;  %v219_v18 = vrot.slane %v177_v11, 3  ;;  %v222_v19 = vrot.slane %v178_v12, 2  ;;  %v225_v20 = vrot.slane %v179_v13, 1  ;;  %v180_v21 = vld [vmem:[#allocation5] sm:$0x1] }
  0x27   :  { %v1903_v22 = vld [vmem:[#allocation11 + $0x18] sm:$0xff]  ;;  %v209_v23 = vsel %vm208_vm1, %v207_v14, %v172_v4  ;;  %v181_v24 = vld [vmem:[#allocation5 + $0x2] sm:$0x1]  ;;  %v182_v25 = vld [vmem:[#allocation5 + $0x4] sm:$0x1]  ;;  %s1763_s29 = smov 120  }
  0x28   :  { %v183_v26 = vld [vmem:[#allocation5 + $0x6] sm:$0x1]  ;;  %1391 = vmatpush.xpose.msk.msra.mxu2 %vm228_vm0, %v1903_v22  ;;  %v212_v27 = vsel %vm211_vm2, %v210_v15, %v209_v23  ;;  %v184_v28 = vld [vmem:[#allocation5 + $0x8] sm:$0x1]  ;;  %v185_v29 = vld [vmem:[#allocation5 + $0xa] sm:$0x1] }
  0x29   :  { %v186_v30 = vld [vmem:[#allocation5 + $0xc] sm:$0x1]  ;;  %1383 = vmatpush.xpose.msk.msra.mxu0 %vm228_vm0, %v1895_v8  ;;  %v215_v31 = vsel %vm214_vm3, %v213_v16, %v212_v27  ;;  %v187_v32 = vld [vmem:[#allocation5 + $0xe] sm:$0x1]  ;;  %v275_v33 = vrot.slane %v181_v24, 7  ;;  %v277_v34 = vrot.slane %v182_v25, 6 }
  0x2a   :  { %1388 = vmatpush.xpose.msk.msra.mxu1 %vm228_vm0, %v1897_v9  ;;  %v279_v35 = vrot.slane %v183_v26, 5  ;;  %v1914_v36 = vld [vmem:[#allocation11 + $0x10] sm:$0xff]  ;;  %v1916_v37 = vld [vmem:[#allocation8] sm:$0xff]  ;;  %v218_v39 = vsel %vm217_vm4, %v216_v17, %v215_v31  ;;  %v281_v40 = vrot.slane %v184_v28, 4  ;;  %v283_v41 = vrot.slane %v185_v29, 3  ;;  %v1925_v46 = vld [vmem:[#allocation11 + $0x8] sm:$0xff] }
  0x2b   :  { %v1918_v38 = vld [vmem:[#allocation10] sm:$0xff]  ;;  %v221_v42 = vsel %vm220_vm5, %v219_v18, %v218_v39  ;;  %v276_v43 = vsel %vm208_vm1, %v275_v33, %v180_v21  ;;  %v285_v44 = vrot.slane %v186_v30, 2  ;;  %v287_v45 = vrot.slane %v187_v32, 1  ;;  %v189_v47 = vld [vmem:[#allocation7 + $0x2] sm:$0x1]  ;;  %s1767_s15 = smov 16  }
  0x2c   :  { %1392 = vmatpush.xpose.msk.msra.mxu2 %vm228_vm0, %v1914_v36  ;;  %v224_v48 = vsel %vm223_vm6, %v222_v19, %v221_v42  ;;  %v278_v49 = vsel %vm211_vm2, %v277_v34, %v276_v43  ;;  %v190_v50 = vld [vmem:[#allocation7 + $0x4] sm:$0x1]  ;;  %v191_v51 = vld [vmem:[#allocation7 + $0x6] sm:$0x1]  ;;  %v192_v52 = vld [vmem:[#allocation7 + $0x8] sm:$0x1] }
  0x2d   :  { %1384 = vmatpush.xpose.msk.msra.mxu0 %vm228_vm0, %v1916_v37  ;;  %v227_v53 = vsel %vm226_vm7, %v225_v20, %v224_v48  ;;  %v280_v54 = vsel %vm214_vm3, %v279_v35, %v278_v49  ;;  %v188_v55 = vld [vmem:[#allocation7] sm:$0x1]  ;;  %v193_v56 = vld [vmem:[#allocation7 + $0xa] sm:$0x1]  ;;  %v194_v57 = vld [vmem:[#allocation7 + $0xc] sm:$0x1] }
  0x2e   :  { %1389 = vmatpush.xpose.msk.msra.mxu1 %vm228_vm0, %v1918_v38  ;;  %v282_v58 = vsel %vm217_vm4, %v281_v40, %v280_v54  ;;  %v334_v59 = vrot.slane %v189_v47, 7  ;;  %v336_v60 = vrot.slane %v190_v50, 6  ;;  %v338_v61 = vrot.slane %v191_v51, 5  ;;  %v195_v63 = vld [vmem:[#allocation7 + $0xe] sm:$0x1]  ;;  %v1941_v6 = vld [vmem:[#allocation11] sm:$0xff] }
  0x2f   :  { %v284_v62 = vsel %vm220_vm5, %v283_v41, %v282_v58  ;;  %v340_v4 = vrot.slane %v192_v52, 4  ;;  %v342_v10 = vrot.slane %v193_v56, 3  ;;  %v344_v13 = vrot.slane %v194_v57, 2  ;;  %v1958_v20 = vld [vmem:[%s2198_s4] ss:$0 sm:$0xff]  ;;  %s1764_s4 = smov 112  }
  0x30   :  { %1393 = vmatpush.xpose.msk.msra.mxu2 %vm228_vm0, %v1925_v46  ;;  %1385 = vmatmul.msk.f32.vlgmr.msra.gmra.mxu0 %vm228_vm0, %v227_v53  ;;  %v286_v5 = vsel %vm223_vm6, %v285_v44, %v284_v62  ;;  %v335_v7 = vsel %vm208_vm1, %v334_v59, %v188_v55  ;;  %v346_v15 = vrot.slane %v195_v63, 1  ;;  %v1963_v21 = vld [vmem:[%s2200_s6] ss:$0 sm:$0xff]  ;;  %s1765_s6 = smov 104   ;;  %s1343_s22 = sshll.u32 %s2206_s12, 4  ;;  %s1344_s22 = int_to_ptr.hbm [resolvable:$true] %s1343_s22 }
  0x31   :  { %v288_v11 = vsel %vm226_vm7, %v287_v45, %v286_v5  ;;  %v337_v12 = vsel %vm211_vm2, %v336_v60, %v335_v7  ;;  %v1977_v28 = vld [vmem:[%s2202_s8] ss:$0 sm:$0xff]  ;;  %s1766_s8 = smov 24   ;;  %s1769_s2 = smov [#allocation17]  }
  0x32   :  { %1390 = vmatmul.msk.f32.vlgmr.msra.gmra.mxu1 %vm228_vm0, %v288_v11  ;;  %v339_v14 = vsel %vm214_vm3, %v338_v61, %v337_v12  ;;  %s1354_s3 = sshll.u32 %s1769_s2, 4  ;;  %s1356_s5 = sshll.u32 %s2207_s13, 4  ;;  %s1355_s3 = int_to_ptr.vmem [resolvable:$true] %s1354_s3  ;;  %s1357_s5 = int_to_ptr.hbm [resolvable:$true] %s1356_s5 }
  0x33   :  { %v341_v16 = vsel %vm217_vm4, %v340_v4, %v339_v14  ;;  %s1770_s12 = smov [#allocation14]  }
  0x34   :  { %1394 = vmatpush.xpose.msk.msra.mxu2 %vm228_vm0, %v1941_v6  ;;  %v343_v17 = vsel %vm220_vm5, %v342_v10, %v341_v16  ;;  %s1328_s13 = sshll.u32 %s1770_s12, 4  ;;  %s1329_s13 = int_to_ptr.vmem [resolvable:$true] %s1328_s13 }
  0x35   :  { %v345_v18 = vsel %vm223_vm6, %v344_v13, %v343_v17 }
  0x36   :  { %v347_v19 = vsel %vm226_vm7, %v346_v15, %v345_v18 }
  0x37   :  { %1395 = vmatmul.msk.f32.vlgmr.msra.gmra.mxu2 %vm228_vm0, %v347_v19 }
  0xad   :  { %v260_v23 = vpop.f32.mrf.mxu0 }
  0xae   :  { %v261_v24 = vadd.f32 %v1958_v20, %v260_v23 }
  0xaf   :  { %v320_v25 = vpop.f32.mrf.mxu1 }
  0xb0   :  { %v263_v26 = vmul.f32 0.35355338, %v261_v24  ;;  %v321_v27 = vadd.f32 %v1963_v21, %v320_v25 }
  0xb2   :  { %460 = vrot.lane.b32.xlu1 %v321_v27, %s1763_s29  ;;  %1396 = vmatpush.xpose.msk.msra.mxu3 %vm382_vm8, %v321_v27 }
  0xb3   :  { %458 = vrot.lane.b32.xlu2 %v263_v26, %s1763_s29 }
  0xb5   :  { %1397 = vmatmul.msk.f32.vlgmr.msra.gmra.mxu3 %vm382_vm8, %v263_v26 }
  0xba   :  { %542 = vrot.lane.b32.xlu1 %v321_v27, %s1764_s4  ;;  %v379_v29 = vpop.f32.mrf.mxu2 }
  0xbb   :  { %540 = vrot.lane.b32.xlu2 %v263_v26, %s1764_s4  ;;  %v1980_v30 = vadd.f32 %v1977_v28, %v379_v29 }
  0xbd   :  { %453 = vmatpush.msrb.mxu3 %v1980_v30 }
  0xc2   :  { %621 = vrot.lane.b32.xlu1 %v263_v26, %s1765_s6 }
 0x10d   :  { %v459_v32 = vpop.permute.xlu2 %458 }
 0x115   :  { %v541_v34 = vpop.permute.xlu2 %540 }
 0x124   :  { %v461_v31 = vpop.permute.xlu1 %460 }
 0x125   :  { %1399 = vmatpush.xpose.msk.msra.mxu3 %vm382_vm8, %v461_v31 }
 0x12c   :  { %v543_v33 = vpop.permute.xlu1 %542 }
 0x12d   :  { %1402 = vmatpush.xpose.msk.msrb.mxu2 %vm382_vm8, %v543_v33 }
 0x130   :  { %1403 = vmatmul.msk.f32.vlgmr.msrb.gmra.mxu2 %vm382_vm8, %v541_v34 }
 0x134   :  { %v622_v61 = vpop.permute.xlu1 %621 }
 0x138   :  { %v406_v35 = vpop.f32.mrf.mxu3 }
 0x139   :  { %v409_v39 = vsel %vm382_vm8, %v406_v35, -inf }
 0x13a   :  { %410 = vmax.xlane.f32.xlu0 %v409_v39 }
 0x1ad   :  { %v411_v40 = vpop.xlane.xlu0 %410 }
 0x1ae   :  { %v412_v41 = vsub.f32 %v406_v35, %v411_v40 }
 0x1b0   :  { %v413_v42 = vmul.f32 1.442695, %v412_v41 }
 0x1b2   :  { %1468 = vpow2.f32 %v413_v42  ;;  %v792_v42 = vld [vmem:[#allocation5 + $0x3] sm:$0x1] }
 0x1b3   :  { %v565_v43 = vpop.f32.mrf.mxu2 }
 0x1b4   :  { %v568_v44 = vsel %vm382_vm8, %v565_v43, -inf }
 0x1b5   :  { %569 = vmax.xlane.f32.xlu1 %v568_v44  ;;  %v860_v44 = vrot.slane %v792_v42, 7 }
 0x1b8   :  { %v1469_v45 = vpop.eup %1468 }
 0x1b9   :  { %v415_v47 = vsel %vm382_vm8, %v1469_v45, 0.0 }
 0x1ba   :  { %416 = vadd.xlane.f32.xlu0 %v415_v47  ;;  %v794_v47 = vld [vmem:[#allocation5 + $0x7] sm:$0x1] }
 0x1ce   :  { %623 = vrot.lane.b32.xlu0 %v321_v27, %s1765_s6 }
 0x228   :  { %v570_v62 = vpop.xlane.xlu1 %569 }
 0x229   :  { %v571_v63 = vsub.f32 %v565_v43, %v570_v62  ;;  %v793_v43 = vld [vmem:[#allocation5 + $0x5] sm:$0x1] }
 0x22b   :  { %v572_v5 = vmul.f32 1.442695, %v571_v63  ;;  %v798_v63 = vld [vmem:[#allocation5 + $0xf] sm:$0x1] }
 0x22d   :  { %v417_v48 = vpop.xlane.xlu0 %416 }
 0x22e   :  { %1470 = vrcp.f32 %v417_v48  ;;  %v429_v52 = vand.u32 2147483648, %v417_v48  ;;  %v427_v54 = vand.u32 2147483647, %v417_v48  ;;  %vm423_vm10 = vweird.f32 %v417_v48 }
 0x22f   :  { %1472 = vpow2.f32 %v572_v5 }
 0x230   :  { %v430_v56 = vor.u32 1.1754944e-38, %v429_v52  ;;  %vm428_vm12 = vcmp.eq.f32.partialorder %v427_v54, 8.507059e+37 }
 0x234   :  { %v1471_v49 = vpop.eup %1470 }
 0x235   :  { %v419_v50 = vmul.f32 %v1471_v49, %v417_v48  ;;  %vm424_vm9 = vweird.f32 %v1471_v49  ;;  %v862_v48 = vrot.slane %v793_v43, 6 }
 0x236   :  { %vm425_vm11 = vmor %vm423_vm10, %vm424_vm9 }
 0x237   :  { %v420_v51 = vsub.f32 1.0, %v419_v50 }
 0x239   :  { %v421_v53 = vmul.f32 %v1471_v49, %v420_v51  ;;  %v864_v51 = vrot.slane %v794_v47, 5 }
 0x23b   :  { %v422_v55 = vadd.f32 %v1471_v49, %v421_v53  ;;  %v796_v53 = vld [vmem:[#allocation5 + $0xb] sm:$0x1] }
 0x23d   :  { %v426_v57 = vsel %vm425_vm11, %v1471_v49, %v422_v55  ;;  %v795_v49 = vld [vmem:[#allocation5 + $0x9] sm:$0x1] }
 0x23e   :  { %v431_v58 = vsel %vm428_vm12, %v430_v56, %v426_v57  ;;  %v866_v55 = vrot.slane %v795_v49, 4  ;;  %v787_v49 = vld [vmem:[#allocation2 + $0x9] sm:$0x1] }
 0x23f   :  { %v1990_v59 = vmul.f32 %v1469_v45, %v431_v58  ;;  %v791_v45 = vld [vmem:[#allocation5 + $0x1] sm:$0x1] }
 0x240   :  { %v624_v60 = vpop.permute.xlu0 %623  ;;  %v861_v50 = vsel %vm208_vm1, %v860_v44, %v791_v45  ;;  %v783_v44 = vld [vmem:[#allocation2 + $0x1] sm:$0x1] }
 0x241   :  { %433 = vst.msk [vmem:[#allocation17] sm:$0xff] %vm382_vm8, %v1990_v59  ;;  %1398 = vmatmul.msk.f32.vlgmr.msrb.gmra.mxu3 %vm382_vm8, %v1990_v59  ;;  %v863_v54 = vsel %vm211_vm2, %v862_v48, %v861_v50 }
 0x242   :  { %1405 = vmatpush.xpose.msk.msrb.mxu3 %vm382_vm8, %v624_v60  ;;  %v865_v58 = vsel %vm214_vm3, %v864_v51, %v863_v54  ;;  %v868_v60 = vrot.slane %v796_v53, 3  ;;  %v821_v53 = vrot.slane %v787_v49, 4  ;;  %v789_v54 = vld [vmem:[#allocation2 + $0xd] sm:$0x1] }
 0x243   :  { %v867_v5 = vsel %vm217_vm4, %v866_v55, %v865_v58 }
 0x249   :  { %1400 = vmatmul.msk.f32.vlgmr.msra.gmra.mxu3 %vm382_vm8, %v459_v32 }
 0x24a   :  { %1418 = vmatpush.xpose.msk.msra.mxu3 %vm228_vm0, %v1885_v1 }
 0x24e   :  { %1419 = vmatpush.xpose.msk.msra.mxu3 %vm228_vm0, %v1893_v3  ;;  %v1473_v3 = vpop.eup %1472 }
 0x24f   :  { %v574_v11 = vsel %vm382_vm8, %v1473_v3, 0.0 }
 0x251   :  { %1406 = vmatmul.msk.f32.vlgmr.msrb.gmra.mxu3 %vm382_vm8, %v622_v61 }
 0x252   :  { %1420 = vmatpush.xpose.msk.msra.mxu3 %vm228_vm0, %v1897_v9 }
 0x256   :  { %1421 = vmatpush.xpose.msk.msra.mxu3 %vm228_vm0, %v1918_v38 }
 0x2c4   :  { %v2007_v4 = vpop.f32.mrf.mxu3 }
 0x2cc   :  { %v483_v7 = vpop.f32.mrf.mxu3 }
 0x2cd   :  { %v486_v1 = vsel %vm382_vm8, %v483_v7, -inf }
 0x2ce   :  { %487 = vmax.xlane.f32.xlu2 %v486_v1 }
 0x2d4   :  { %v646_v10 = vpop.f32.mrf.mxu3 }
 0x2d5   :  { %v649_v12 = vsel %vm382_vm8, %v646_v10, -inf }
 0x2d6   :  { %575 = vadd.xlane.f32.xlu2 %v574_v11  ;;  %650 = vmax.xlane.f32.xlu0 %v649_v12  ;;  %v872_v11 = vrot.slane %v798_v63, 1 }
 0x2ea   :  { %676 = vrot.lane.b32.xlu0 %v1980_v30, %s1765_s6 }
 0x341   :  { %v488_v9 = vpop.xlane.xlu2 %487 }
 0x342   :  { %v489_v38 = vsub.f32 %v483_v7, %v488_v9 }
 0x344   :  { %v490_v13 = vmul.f32 1.442695, %v489_v38 }
 0x346   :  { %1474 = vpow2.f32 %v490_v13 }
 0x349   :  { %v576_v14 = vpop.xlane.xlu2 %575  ;;  %v651_v15 = vpop.xlane.xlu0 %650 }
 0x34a   :  { %1476 = vrcp.f32 %v576_v14  ;;  %v652_v16 = vsub.f32 %v646_v10, %v651_v15  ;;  %v588_v26 = vand.u32 2147483648, %v576_v14  ;;  %v586_v31 = vand.u32 2147483647, %v576_v14 }
 0x34b   :  { %vm582_vm14 = vweird.f32 %v576_v14  ;;  %v869_v10 = vsel %vm220_vm5, %v868_v60, %v867_v5  ;;  %v167_v60 = vld [vmem:[#allocation13 + $0x18] sm:$0xff] }
 0x34c   :  { %v2014_v17 = vpop.eup %1474  ;;  %v653_v18 = vmul.f32 1.442695, %v652_v16  ;;  %v589_v34 = vor.u32 1.1754944e-38, %v588_v26  ;;  %vm587_vm9 = vcmp.eq.f32.partialorder %v586_v31, 8.507059e+37  ;;  %1408 = vmatpush.xpose.msk.msrb.mxu1 %vm228_vm0, %v167_v60 }
 0x34d   :  { %v492_v19 = vsel %vm382_vm8, %v2014_v17, 0.0 }
 0x34e   :  { %493 = vadd.xlane.f32.xlu2 %v492_v19  ;;  %1478 = vpow2.f32 %v653_v18 }
 0x350   :  { %v1477_v23 = vpop.eup %1476 }
 0x351   :  { %v578_v24 = vmul.f32 %v1477_v23, %v576_v14  ;;  %vm583_vm13 = vweird.f32 %v1477_v23 }
 0x352   :  { %vm584_vm15 = vmor %vm582_vm14, %vm583_vm13 }
 0x353   :  { %v579_v25 = vsub.f32 1.0, %v578_v24 }
 0x354   :  { %v2018_v27 = vpop.eup %1478 }
 0x355   :  { %v580_v29 = vmul.f32 %v1477_v23, %v579_v25  ;;  %v655_v32 = vsel %vm382_vm8, %v2018_v27, 0.0 }
 0x356   :  { %656 = vadd.xlane.f32.xlu1 %v655_v32 }
 0x357   :  { %v581_v33 = vadd.f32 %v1477_v23, %v580_v29 }
 0x359   :  { %v585_v35 = vsel %vm584_vm15, %v1477_v23, %v581_v33 }
 0x35a   :  { %v590_v39 = vsel %vm587_vm9, %v589_v34, %v585_v35  ;;  %v784_v34 = vld [vmem:[#allocation2 + $0x3] sm:$0x1] }
 0x35b   :  { %v2022_v40 = vmul.f32 %v1473_v3, %v590_v39  ;;  %v815_v42 = vrot.slane %v784_v34, 7 }
 0x35c   :  { %v677_v61 = vpop.permute.xlu0 %676 }
 0x35d   :  { %593 = vst.msk [vmem:[#allocation17 + $0x10] sm:$0xff] %vm382_vm8, %v2022_v40  ;;  %v816_v48 = vsel %vm208_vm1, %v815_v42, %v783_v44  ;;  %v803_v42 = vld [vmem:[#allocation7 + $0x9] sm:$0x1]  ;;  %v805_v44 = vld [vmem:[#allocation7 + $0xd] sm:$0x1] }
 0x366   :  { %514 = vrot.lane.b32.xlu2 %v1980_v30, %s1763_s29 }
 0x36f   :  { %595 = vrot.lane.b32.xlu1 %v1980_v30, %s1764_s4  ;;  %v797_v30 = vld [vmem:[#allocation5 + $0xd] sm:$0x1] }
 0x370   :  { %v870_v7 = vrot.slane %v797_v30, 2  ;;  %v825_v30 = vrot.slane %v789_v54, 2 }
 0x372   :  { %v871_v38 = vsel %vm223_vm6, %v870_v7, %v869_v10 }
 0x373   :  { %v873_v13 = vsel %vm226_vm7, %v872_v11, %v871_v38 }
 0x374   :  { %1422 = vmatmul.msk.f32.vlgmr.msra.gmra.mxu3 %vm228_vm0, %v873_v13 }
 0x3c1   :  { %v494_v41 = vpop.xlane.xlu2 %493 }
 0x3c2   :  { %1480 = vrcp.f32 %v494_v41  ;;  %v506_v3 = vand.u32 2147483648, %v494_v41  ;;  %v504_v9 = vand.u32 2147483647, %v494_v41  ;;  %vm500_vm11 = vweird.f32 %v494_v41 }
 0x3c4   :  { %v507_v15 = vor.u32 1.1754944e-38, %v506_v3  ;;  %vm505_vm13 = vcmp.eq.f32.partialorder %v504_v9, 8.507059e+37 }
 0x3c8   :  { %v1481_v52 = vpop.eup %1480 }
 0x3c9   :  { %v496_v56 = vmul.f32 %v1481_v52, %v494_v41  ;;  %v515_v57 = vpop.permute.xlu2 %514  ;;  %v657_v62 = vpop.xlane.xlu1 %656  ;;  %vm501_vm10 = vweird.f32 %v1481_v52  ;;  %v785_v41 = vld [vmem:[#allocation2 + $0x5] sm:$0x1] }
 0x3ca   :  { %535 = vmatpush.msrb.mxu0 %v515_v57  ;;  %1482 = vrcp.f32 %v657_v62  ;;  %vm502_vm12 = vmor %vm500_vm11, %vm501_vm10  ;;  %v669_v26 = vand.u32 2147483648, %v657_v62  ;;  %v667_v31 = vand.u32 2147483647, %v657_v62  ;;  %vm663_vm15 = vweird.f32 %v657_v62  ;;  %v790_v57 = vld [vmem:[#allocation2 + $0xf] sm:$0x1] }
 0x3cb   :  { %v497_v1 = vsub.f32 1.0, %v496_v56  ;;  %v817_v45 = vrot.slane %v785_v41, 6  ;;  %vm717_vm11 = vcmask 130048  }
 0x3cc   :  { %697 = vmatpush.msra.mxu0 %v677_v61  ;;  %v670_v35 = vor.u32 1.1754944e-38, %v669_v26  ;;  %vm668_vm10 = vcmp.eq.f32.partialorder %v667_v31, 8.507059e+37  ;;  %v165_v61 = vld [vmem:[#allocation13 + $0x8] sm:$0xff]  ;;  %v800_v26 = vld [vmem:[#allocation7 + $0x3] sm:$0x1] }
 0x3cd   :  { %v498_v12 = vmul.f32 %v1481_v52, %v497_v1  ;;  %v904_v41 = vrot.slane %v800_v26, 7 }
 0x3cf   :  { %v499_v14 = vadd.f32 %v1481_v52, %v498_v12 }
 0x3d0   :  { %v1483_v16 = vpop.eup %1482 }
 0x3d1   :  { %v503_v18 = vsel %vm502_vm12, %v1481_v52, %v499_v14  ;;  %v659_v19 = vmul.f32 %v1483_v16, %v657_v62  ;;  %vm664_vm14 = vweird.f32 %v1483_v16  ;;  %v788_v52 = vld [vmem:[#allocation2 + $0xb] sm:$0x1]  ;;  %vm719_vm12 = vcmask 195584  }
 0x3d2   :  { %v508_v23 = vsel %vm505_vm13, %v507_v15, %v503_v18  ;;  %vm665_vm9 = vmor %vm663_vm15, %vm664_vm14  ;;  %v823_v55 = vrot.slane %v788_v52, 3  ;;  %vm774_vm13 = vcmask 253952   ;;  %v914_v52 = vrot.slane %v805_v44, 2 }
 0x3d3   :  { %v509_v24 = vmul.f32 %v2014_v17, %v508_v23  ;;  %v660_v25 = vsub.f32 1.0, %v659_v19  ;;  %v2108_v19 = vld [vmem:[%s2204_s10] ss:$0 sm:$0xff]  ;;  %s1768_s10 = smov [#allocation15]  }
 0x3d4   :  { %s1341_s0 = sshll.u32 %s1768_s10, 4  ;;  %s1342_s0 = int_to_ptr.vmem [resolvable:$true] %s1341_s0 }
 0x3d5   :  { %511 = vst.msk [vmem:[#allocation17 + $0x8] sm:$0xff] %vm382_vm8, %v509_v24  ;;  %1401 = vmatmul.msk.f32.vlgmr.msrb.gmra.mxu0 %vm382_vm8, %v509_v24  ;;  %v661_v29 = vmul.f32 %v1483_v16, %v660_v25  ;;  %v512_v33 = vadd.f32 %v509_v24, %v1990_v59  ;;  %v786_v59 = vld [vmem:[#allocation2 + $0x7] sm:$0x1]  ;;  %v799_v25 = vld [vmem:[#allocation7 + $0x1] sm:$0x1] }
 0x3d6   :  { %1423 = vmatpush.xpose.msk.msrb.mxu0 %vm228_vm0, %v1903_v22  ;;  %v819_v50 = vrot.slane %v786_v59, 5  ;;  %v905_v59 = vsel %vm208_vm1, %v904_v41, %v799_v25 }
 0x3d7   :  { %v662_v32 = vadd.f32 %v1483_v16, %v661_v29  ;;  %v594_v22 = vadd.f32 %v2022_v40, %v512_v33  ;;  %v801_v29 = vld [vmem:[#allocation7 + $0x5] sm:$0x1] }
 0x3d9   :  { %v666_v17 = vsel %vm665_vm9, %v1483_v16, %v662_v32 }
 0x3da   :  { %1424 = vmatpush.xpose.msk.msrb.mxu0 %vm228_vm0, %v1914_v36  ;;  %v671_v39 = vsel %vm668_vm10, %v670_v35, %v666_v17 }
 0x3db   :  { %v672_v43 = vmul.f32 %v2018_v27, %v671_v39  ;;  %v818_v27 = vsel %vm211_vm2, %v817_v45, %v816_v48  ;;  %v802_v39 = vld [vmem:[#allocation7 + $0x7] sm:$0x1] }
 0x3dc   :  { %v908_v48 = vrot.slane %v802_v39, 5 }
 0x3dd   :  { %674 = vst.msk [vmem:[#allocation17 + $0x18] sm:$0xff] %vm382_vm8, %v672_v43  ;;  %1407 = vmatmul.msk.f32.vlgmr.msra.gmra.mxu0 %vm382_vm8, %v672_v43  ;;  %v675_v47 = vadd.f32 %v672_v43, %v594_v22  ;;  %v804_v43 = vld [vmem:[#allocation7 + $0xb] sm:$0x1]  ;;  %v806_v22 = vld [vmem:[#allocation7 + $0xf] sm:$0x1] }
 0x3de   :  { %1425 = vmatpush.xpose.msk.msrb.mxu0 %vm228_vm0, %v1925_v46  ;;  %v820_v46 = vsel %vm214_vm3, %v819_v50, %v818_v27  ;;  %v912_v50 = vrot.slane %v804_v43, 3 }
 0x3df   :  { %v702_v36 = vmul.f32 0.25, %v675_v47  ;;  %v822_v56 = vsel %vm217_vm4, %v821_v53, %v820_v46  ;;  %v906_v47 = vrot.slane %v801_v29, 6  ;;  %v916_v46 = vrot.slane %v806_v22, 1 }
 0x3e1   :  { %v596_v51 = vpop.permute.xlu1 %595  ;;  %703 = vst.msk [vmem:[#allocation15] sm:$0xff] %vm382_vm8, %v702_v36  ;;  %v910_v36 = vrot.slane %v803_v42, 4  ;;  %v907_v27 = vsel %vm211_vm2, %v906_v47, %v905_v59 }
 0x3e2   :  { %616 = vmatpush.msra.mxu2 %v596_v51  ;;  %1426 = vmatpush.xpose.msk.msrb.mxu0 %vm228_vm0, %v1941_v6  ;;  %v824_v6 = vsel %vm220_vm5, %v823_v55, %v822_v56  ;;  %v909_v53 = vsel %vm214_vm3, %v908_v48, %v907_v27 }
 0x3e3   :  { %1404 = vmatmul.msk.f32.vlgmr.msra.gmra.mxu2 %vm382_vm8, %v2022_v40  ;;  %v827_v40 = vrot.slane %v790_v57, 1  ;;  %v826_v58 = vsel %vm223_vm6, %v825_v30, %v824_v6  ;;  %v911_v54 = vsel %vm217_vm4, %v910_v36, %v909_v53 }
 0x3e4   :  { %1413 = vmatpush.xpose.msk.msrb.mxu2 %vm228_vm0, %v1883_v0  ;;  %v913_v55 = vsel %vm220_vm5, %v912_v50, %v911_v54 }
 0x3e5   :  { %v828_v0 = vsel %vm226_vm7, %v827_v40, %v826_v58  ;;  %v915_v56 = vsel %vm223_vm6, %v914_v52, %v913_v55 }
 0x3e6   :  { %v917_v57 = vsel %vm226_vm7, %v916_v46, %v915_v56 }
 0x3e7   :  { %1427 = vmatmul.msk.f32.vlgmr.msrb.gmra.mxu0 %vm228_vm0, %v917_v57 }
 0x3e8   :  { %1414 = vmatpush.xpose.msk.msrb.mxu2 %vm228_vm0, %v1891_v2  ;;  %v166_v2 = vld [vmem:[#allocation13 + $0x10] sm:$0xff] }
 0x3e9   :  { %1409 = vmatpush.xpose.msk.msrb.mxu1 %vm228_vm0, %v166_v2 }
 0x3ec   :  { %1415 = vmatpush.xpose.msk.msrb.mxu2 %vm228_vm0, %v1895_v8 }
 0x3ed   :  { %1410 = vmatpush.xpose.msk.msrb.mxu1 %vm228_vm0, %v165_v61 }
 0x3f0   :  { %1416 = vmatpush.xpose.msk.msrb.mxu2 %vm228_vm0, %v1916_v37  ;;  %v164_v37 = vld [vmem:[#allocation13] sm:$0xff] }
 0x3f1   :  { %1411 = vmatpush.xpose.msk.msrb.mxu1 %vm228_vm0, %v164_v37 }
 0x3f3   :  { %1417 = vmatmul.msk.f32.vlgmr.msrb.gmra.mxu2 %vm228_vm0, %v828_v0 }
 0x3f7   :  { %v893_v62 = vpop.f32.mrf.mxu3 }
 0x3f8   :  { %v894_v63 = vadd.f32 %v1963_v21, %v893_v62 }
 0x3fa   :  { %1428 = vmatpush.xpose.msk.msra.mxu1 %vm382_vm8, %v894_v63 }
 0x452   :  { %v537_v8 = vpop.f32.mrf.mxu0 }
 0x453   :  { %705 = vrot.lane.b32.xlu2 %v537_v8, %s1757_s1 }
 0x45a   :  { %v699_v5 = vpop.f32.mrf.mxu0 }
 0x45b   :  { %1018 = vrot.lane.b32.xlu2 %v894_v63, %s1763_s29  ;;  %713 = vrot.lane.b32.xlu1 %v699_v5, %s1766_s8 }
 0x463   :  { %1181 = vrot.lane.b32.xlu2 %v894_v63, %s1765_s6  ;;  %1100 = vrot.lane.b32.xlu1 %v894_v63, %s1764_s4 }
 0x466   :  { %v618_v7 = vpop.f32.mrf.mxu2 }
 0x467   :  { %709 = vrot.lane.b32.xlu0 %v618_v7, %s1767_s15 }
 0x476   :  { %v848_v21 = vpop.f32.mrf.mxu2 }
 0x477   :  { %v849_v1 = vadd.f32 %v1958_v20, %v848_v21 }
 0x479   :  { %v851_v3 = vmul.f32 0.35355338, %v849_v1 }
 0x47b   :  { %1016 = vrot.lane.b32.xlu0 %v851_v3, %s1763_s29  ;;  %1179 = vrot.lane.b32.xlu1 %v851_v3, %s1765_s6 }
 0x483   :  { %1098 = vrot.lane.b32.xlu0 %v851_v3, %s1764_s4 }
 0x4ad   :  { %v706_v10 = vpop.permute.xlu2 %705 }
 0x4ae   :  { %v716_v20 = vsel %vm382_vm8, %v2007_v4, %v706_v10 }
 0x4b5   :  { %v1019_v11 = vpop.permute.xlu2 %1018 }
 0x4b6   :  { %1431 = vmatpush.xpose.msk.msrb.mxu3 %vm382_vm8, %v1019_v11 }
 0x4bd   :  { %v1182_v12 = vpop.permute.xlu2 %1181 }
 0x4be   :  { %1437 = vmatpush.xpose.msk.msra.mxu3 %vm382_vm8, %v1182_v12 }
 0x4cd   :  { %v714_v9 = vpop.permute.xlu1 %713 }
 0x4d5   :  { %v1101_v15 = vpop.permute.xlu1 %1100 }
 0x4d9   :  { %v710_v38 = vpop.permute.xlu0 %709 }
 0x4da   :  { %v718_v13 = vsel %vm717_vm11, %v716_v20, %v710_v38 }
 0x4db   :  { %v720_v14 = vsel %vm719_vm12, %v718_v13, %v714_v9 }
 0x4dc   :  { %1412 = vmatmul.msk.f32.vlgmr.msrb.gmra.mxu1 %vm228_vm0, %v720_v14 }
 0x4dd   :  { %1434 = vmatpush.xpose.msk.msrb.mxu1 %vm382_vm8, %v1101_v15 }
 0x4e4   :  { %1429 = vmatmul.msk.f32.vlgmr.msra.gmra.mxu1 %vm382_vm8, %v851_v3 }
 0x4e5   :  { %1440 = vmatpush.xpose.msk.msra.mxu1 %vm228_vm0, %v167_v60 }
 0x4e9   :  { %1441 = vmatpush.xpose.msk.msra.mxu1 %vm228_vm0, %v166_v2  ;;  %v937_v2 = vpop.f32.mrf.mxu0 }
 0x4ea   :  { %v938_v62 = vadd.f32 %v1977_v28, %v937_v2 }
 0x4ec   :  { %1011 = vmatpush.msra.mxu2 %v938_v62 }
 0x4ed   :  { %v1017_v16 = vpop.permute.xlu0 %1016  ;;  %1442 = vmatpush.xpose.msk.msra.mxu1 %vm228_vm0, %v165_v61  ;;  %v1180_v4 = vpop.permute.xlu1 %1179 }
 0x4ee   :  { %1432 = vmatmul.msk.f32.vlgmr.msrb.gmra.mxu3 %vm382_vm8, %v1017_v16 }
 0x4f1   :  { %1443 = vmatpush.xpose.msk.msra.mxu1 %vm228_vm0, %v164_v37 }
 0x4f5   :  { %v1099_v18 = vpop.permute.xlu0 %1098 }
 0x4f6   :  { %1435 = vmatmul.msk.f32.vlgmr.msrb.gmra.mxu1 %vm382_vm8, %v1099_v18  ;;  %1438 = vmatmul.msk.f32.vlgmr.msra.gmra.mxu3 %vm382_vm8, %v1180_v4 }
 0x559   :  { %v756_v23 = vpop.f32.mrf.mxu1 }
 0x55a   :  { %v757_v24 = vadd.f32 %v2108_v19, %v756_v23 }
 0x55c   :  { %v760_v31 = vrot.slane %v757_v24, 1  ;;  %v761_v32 = vrot.slane %v757_v24, 2  ;;  %v762_v33 = vrot.slane %v757_v24, 3  ;;  %775 = vst.msk [vmem:[#allocation14] sm:$0x1] %vm774_vm13, %v757_v24  ;;  %v763_v34 = vrot.slane %v757_v24, 4 }
 0x55d   :  { %v764_v35 = vrot.slane %v757_v24, 5  ;;  %v765_v17 = vrot.slane %v757_v24, 6  ;;  %v766_v45 = vrot.slane %v757_v24, 7 }
 0x55e   :  { %776 = vst.msk [vmem:[#allocation14 + $0x2] sm:$0x1] %vm774_vm13, %v760_v31 }
 0x55f   :  { %777 = vst.msk [vmem:[#allocation14 + $0x4] sm:$0x1] %vm774_vm13, %v761_v32 }
 0x560   :  { %778 = vst.msk [vmem:[#allocation14 + $0x6] sm:$0x1] %vm774_vm13, %v762_v33 }
 0x561   :  { %779 = vst.msk [vmem:[#allocation14 + $0x8] sm:$0x1] %vm774_vm13, %v763_v34  ;;  %v963_v49 = vpop.f32.mrf.mxu1 }
 0x562   :  { %780 = vst.msk [vmem:[#allocation14 + $0xa] sm:$0x1] %vm774_vm13, %v764_v35  ;;  %v966_v51 = vsel %vm382_vm8, %v963_v49, -inf }
 0x563   :  { %781 = vst.msk [vmem:[#allocation14 + $0xc] sm:$0x1] %vm774_vm13, %v765_v17  ;;  %967 = vmax.xlane.f32.xlu2 %v966_v51 }
 0x564   :  { %782 = vst.msk [vmem:[#allocation14 + $0xe] sm:$0x1] %vm774_vm13, %v766_v45 }
 0x571   :  { %v1041_v30 = vpop.f32.mrf.mxu3 }
 0x572   :  { %v1044_v6 = vsel %vm382_vm8, %v1041_v30, -inf }
 0x573   :  { %1045 = vmax.xlane.f32.xlu0 %v1044_v6  ;;  %v1123_v40 = vpop.f32.mrf.mxu1 }
 0x574   :  { %v1126_v58 = vsel %vm382_vm8, %v1123_v40, -inf }
 0x575   :  { %1127 = vmax.xlane.f32.xlu1 %v1126_v58 }
 0x579   :  { %v1204_v0 = vpop.f32.mrf.mxu3 }
 0x57a   :  { %v1207_v60 = vsel %vm382_vm8, %v1204_v0, -inf }
 0x57b   :  { %1208 = vmax.xlane.f32.xlu2 %v1207_v60 }
 0x5d6   :  { %v968_v61 = vpop.xlane.xlu2 %967 }
 0x5d7   :  { %v969_v11 = vsub.f32 %v963_v49, %v968_v61 }
 0x5d9   :  { %v970_v38 = vmul.f32 1.442695, %v969_v11 }
 0x5e6   :  { %v1046_v8 = vpop.xlane.xlu0 %1045 }
 0x5e7   :  { %v1047_v63 = vsub.f32 %v1041_v30, %v1046_v8 }
 0x5e8   :  { %v1128_v37 = vpop.xlane.xlu1 %1127 }
 0x5e9   :  { %v1048_v5 = vmul.f32 1.442695, %v1047_v63  ;;  %v1129_v7 = vsub.f32 %v1123_v40, %v1128_v37 }
 0x5eb   :  { %1484 = vpow2.f32 %v1048_v5  ;;  %v1130_v21 = vmul.f32 1.442695, %v1129_v7 }
 0x5ed   :  { %1486 = vpow2.f32 %v1130_v21 }
 0x5ee   :  { %v1209_v1 = vpop.xlane.xlu2 %1208 }
 0x5ef   :  { %v1210_v3 = vsub.f32 %v1204_v0, %v1209_v1 }
 0x5f1   :  { %v1485_v10 = vpop.eup %1484  ;;  %v1211_v12 = vmul.f32 1.442695, %v1210_v3 }
 0x5f2   :  { %v1050_v9 = vsel %vm382_vm8, %v1485_v10, 0.0 }
 0x5f3   :  { %v2133_v20 = vpop.eup %1486  ;;  %1488 = vpow2.f32 %v1211_v12  ;;  %1051 = vadd.xlane.f32.xlu1 %v1050_v9 }
 0x5f4   :  { %v1132_v28 = vsel %vm382_vm8, %v2133_v20, 0.0  ;;  %1490 = vpow2.f32 %v970_v38 }
 0x5f5   :  { %1133 = vadd.xlane.f32.xlu2 %v1132_v28 }
 0x5f9   :  { %v2137_v13 = vpop.eup %1488 }
 0x5fa   :  { %v1213_v14 = vsel %vm382_vm8, %v2137_v13, 0.0  ;;  %v2141_v15 = vpop.eup %1490 }
 0x5fb   :  { %1214 = vadd.xlane.f32.xlu0 %v1213_v14  ;;  %v972_v16 = vsel %vm382_vm8, %v2141_v15, 0.0 }
 0x603   :  { %973 = vadd.xlane.f32.xlu0 %v972_v16 }
 0x60c   :  { %1072 = vrot.lane.b32.xlu1 %v938_v62, %s1763_s29 }
 0x60d   :  { %1153 = vrot.lane.b32.xlu2 %v938_v62, %s1764_s4 }
 0x617   :  { %1234 = vrot.lane.b32.xlu0 %v938_v62, %s1765_s6 }
 0x666   :  { %v1052_v4 = vpop.xlane.xlu1 %1051 }
 0x667   :  { %1492 = vrcp.f32 %v1052_v4  ;;  %v1062_v33 = vand.u32 2147483647, %v1052_v4  ;;  %v1064_v34 = vand.u32 2147483648, %v1052_v4  ;;  %vm1058_vm2 = vweird.f32 %v1052_v4 }
 0x668   :  { %v1134_v18 = vpop.xlane.xlu2 %1133 }
 0x669   :  { %1494 = vrcp.f32 %v1134_v18  ;;  %v1146_v39 = vand.u32 2147483648, %v1134_v18  ;;  %v1144_v43 = vand.u32 2147483647, %v1134_v18  ;;  %vm1063_vm5 = vcmp.eq.f32.partialorder %v1062_v33, 8.507059e+37 }
 0x66a   :  { %v1065_v22 = vor.u32 1.1754944e-38, %v1064_v34  ;;  %vm1140_vm6 = vweird.f32 %v1134_v18 }
 0x66b   :  { %v1147_v49 = vor.u32 1.1754944e-38, %v1146_v39  ;;  %vm1145_vm14 = vcmp.eq.f32.partialorder %v1144_v43, 8.507059e+37 }
 0x66d   :  { %v1493_v23 = vpop.eup %1492 }
 0x66e   :  { %v1054_v24 = vmul.f32 %v1493_v23, %v1052_v4  ;;  %v1215_v25 = vpop.xlane.xlu0 %1214  ;;  %vm1059_vm1 = vweird.f32 %v1493_v23 }
 0x66f   :  { %v1495_v26 = vpop.eup %1494  ;;  %1496 = vrcp.f32 %v1215_v25  ;;  %vm1060_vm4 = vmor %vm1058_vm2, %vm1059_vm1  ;;  %v1227_v53 = vand.u32 2147483648, %v1215_v25  ;;  %v1225_v54 = vand.u32 2147483647, %v1215_v25  ;;  %vm1221_vm9 = vweird.f32 %v1215_v25 }
 0x670   :  { %v1055_v29 = vsub.f32 1.0, %v1054_v24  ;;  %v1136_v31 = vmul.f32 %v1495_v26, %v1134_v18  ;;  %v1154_v32 = vpop.permute.xlu2 %1153  ;;  %vm1141_vm3 = vweird.f32 %v1495_v26 }
 0x671   :  { %1174 = vmatpush.msrb.mxu2 %v1154_v32  ;;  %vm1142_vm7 = vmor %vm1140_vm6, %vm1141_vm3  ;;  %v1228_v30 = vor.u32 1.1754944e-38, %v1227_v53  ;;  %vm1226_vm1 = vcmp.eq.f32.partialorder %v1225_v54, 8.507059e+37 }
 0x672   :  { %v1056_v35 = vmul.f32 %v1493_v23, %v1055_v29  ;;  %v1137_v17 = vsub.f32 1.0, %v1136_v31 }
 0x674   :  { %v1057_v41 = vadd.f32 %v1493_v23, %v1056_v35  ;;  %v1138_v42 = vmul.f32 %v1495_v26, %v1137_v17 }
 0x675   :  { %v1497_v44 = vpop.eup %1496 }
 0x676   :  { %v1061_v59 = vsel %vm1060_vm4, %v1493_v23, %v1057_v41  ;;  %v1139_v45 = vadd.f32 %v1495_v26, %v1138_v42  ;;  %v1217_v47 = vmul.f32 %v1497_v44, %v1215_v25  ;;  %v974_v48 = vpop.xlane.xlu0 %973  ;;  %vm1222_vm15 = vweird.f32 %v1497_v44 }
 0x677   :  { %v1066_v36 = vsel %vm1063_vm5, %v1065_v22, %v1061_v59  ;;  %1498 = vrcp.f32 %v974_v48  ;;  %vm1223_vm10 = vmor %vm1221_vm9, %vm1222_vm15  ;;  %v986_v61 = vand.u32 2147483648, %v974_v48  ;;  %v984_v62 = vand.u32 2147483647, %v974_v48 }
 0x678   :  { %v1143_v50 = vsel %vm1142_vm7, %v1495_v26, %v1139_v45  ;;  %v1218_v51 = vsub.f32 1.0, %v1217_v47  ;;  %v1067_v27 = vmul.f32 %v1485_v10, %v1066_v36  ;;  %vm980_vm3 = vweird.f32 %v974_v48 }
 0x679   :  { %v1148_v52 = vsel %vm1145_vm14, %v1147_v49, %v1143_v50  ;;  %v987_v37 = vor.u32 1.1754944e-38, %v986_v61  ;;  %vm985_vm5 = vcmp.eq.f32.partialorder %v984_v62, 8.507059e+37 }
 0x67a   :  { %v1219_v46 = vmul.f32 %v1497_v44, %v1218_v51  ;;  %1069 = vst.msk [vmem:[#allocation17 + $0x28] sm:$0xff] %vm382_vm8, %v1067_v27  ;;  %v1149_v55 = vmul.f32 %v2133_v20, %v1148_v52 }
 0x67c   :  { %v1220_v56 = vadd.f32 %v1497_v44, %v1219_v46  ;;  %1151 = vst.msk [vmem:[#allocation17 + $0x30] sm:$0xff] %vm382_vm8, %v1149_v55 }
 0x67d   :  { %v1499_v57 = vpop.eup %1498 }
 0x67e   :  { %v1224_v6 = vsel %vm1223_vm10, %v1497_v44, %v1220_v56  ;;  %v976_v40 = vmul.f32 %v1499_v57, %v974_v48  ;;  %v1073_v58 = vpop.permute.xlu1 %1072  ;;  %vm981_vm2 = vweird.f32 %v1499_v57 }
 0x67f   :  { %v1229_v0 = vsel %vm1226_vm1, %v1228_v30, %v1224_v6  ;;  %1093 = vmatpush.msra.mxu0 %v1073_v58  ;;  %vm982_vm4 = vmor %vm980_vm3, %vm981_vm2 }
 0x680   :  { %v977_v60 = vsub.f32 1.0, %v976_v40  ;;  %1433 = vmatmul.msk.f32.vlgmr.msra.gmra.mxu0 %vm382_vm8, %v1067_v27  ;;  %v1230_v2 = vmul.f32 %v2137_v13, %v1229_v0 }
 0x682   :  { %v978_v8 = vmul.f32 %v1499_v57, %v977_v60  ;;  %1232 = vst.msk [vmem:[#allocation17 + $0x38] sm:$0xff] %vm382_vm8, %v1230_v2 }
 0x684   :  { %v979_v63 = vadd.f32 %v1499_v57, %v978_v8 }
 0x686   :  { %v983_v5 = vsel %vm982_vm4, %v1499_v57, %v979_v63 }
 0x687   :  { %v988_v7 = vsel %vm985_vm5, %v987_v37, %v983_v5 }
 0x688   :  { %v989_v21 = vmul.f32 %v2141_v15, %v988_v7 }
 0x689   :  { %v1235_v1 = vpop.permute.xlu0 %1234 }
 0x68a   :  { %991 = vst.msk [vmem:[#allocation17 + $0x20] sm:$0xff] %vm382_vm8, %v989_v21  ;;  %1430 = vmatmul.msk.f32.vlgmr.msra.gmra.mxu2 %vm382_vm8, %v989_v21  ;;  %1255 = vmatpush.msrb.mxu0 %v1235_v1  ;;  %v1070_v3 = vadd.f32 %v1067_v27, %v989_v21 }
 0x68b   :  { %1439 = vmatmul.msk.f32.vlgmr.msrb.gmra.mxu0 %vm382_vm8, %v1230_v2 }
 0x68c   :  { %v1152_v10 = vadd.f32 %v1149_v55, %v1070_v3 }
 0x68e   :  { %v1233_v11 = vadd.f32 %v1230_v2, %v1152_v10 }
 0x690   :  { %v1260_v12 = vmul.f32 0.25, %v1233_v11 }
 0x692   :  { %1436 = vmatmul.msk.f32.vlgmr.msrb.gmra.mxu2 %vm382_vm8, %v1149_v55  ;;  %1262 = vst.msk [vmem:[#allocation15 + $0x8] sm:$0xff] %vm382_vm8, %v1260_v12 }
 0x693   :  { %1349 = dma.vmem_to_hbm [thread:$0]  %s1342_s0, 256, %s1344_s22, [#allocation16], %s1756_s20, %s1756_s20, %s1757_s1  }
 0x694   :  { %1362 = dma.vmem_to_hbm [thread:$0]  %s1355_s3, 1024, %s1357_s5, [#allocation16], %s1756_s20, %s1756_s20, %s1757_s1  }
 0x695   :  { %s1330_s20 = sshll.u32 %s2205_s11, 4  ;;  %s1331_s20 = int_to_ptr.hbm [resolvable:$true] %s1330_s20 }
 0x6fd   :  { %v1095_v9 = vpop.f32.mrf.mxu0 }
 0x6fe   :  { %1264 = vrot.lane.b32.xlu1 %v1095_v9, %s1757_s1 }
 0x708   :  { %v1257_v20 = vpop.f32.mrf.mxu0 }
 0x709   :  { %1272 = vrot.lane.b32.xlu2 %v1257_v20, %s1766_s8 }
 0x70d   :  { %v1013_v28 = vpop.f32.mrf.mxu2 }
 0x715   :  { %v1176_v38 = vpop.f32.mrf.mxu2 }
 0x716   :  { %1268 = vrot.lane.b32.xlu0 %v1176_v38, %s1767_s15 }
 0x763   :  { %v1273_v16 = vpop.permute.xlu2 %1272 }
 0x770   :  { %v1265_v13 = vpop.permute.xlu1 %1264 }
 0x771   :  { %v1275_v14 = vsel %vm382_vm8, %v1013_v28, %v1265_v13 }
 0x788   :  { %v1269_v15 = vpop.permute.xlu0 %1268 }
 0x789   :  { %v1276_v4 = vsel %vm717_vm11, %v1275_v14, %v1269_v15 }
 0x78a   :  { %v1277_v18 = vsel %vm719_vm12, %v1276_v4, %v1273_v16 }
 0x78b   :  { %1444 = vmatmul.msk.f32.vlgmr.msra.gmra.mxu1 %vm228_vm0, %v1277_v18 }
 0x808   :  { %v1298_v23 = vpop.f32.mrf.mxu1 }
 0x809   :  { %v1299_v24 = vadd.f32 %v2108_v19, %v1298_v23 }
 0x80b   :  { %v1302_v25 = vrot.slane %v1299_v24, 1  ;;  %v1303_v26 = vrot.slane %v1299_v24, 2  ;;  %v1304_v29 = vrot.slane %v1299_v24, 3  ;;  %1316 = vst.msk [vmem:[#allocation14 + $0x1] sm:$0x1] %vm774_vm13, %v1299_v24  ;;  %v1305_v31 = vrot.slane %v1299_v24, 4 }
 0x80c   :  { %v1306_v32 = vrot.slane %v1299_v24, 5  ;;  %v1307_v33 = vrot.slane %v1299_v24, 6  ;;  %v1308_v34 = vrot.slane %v1299_v24, 7 }
 0x80d   :  { %1317 = vst.msk [vmem:[#allocation14 + $0x3] sm:$0x1] %vm774_vm13, %v1302_v25 }
 0x80e   :  { %1318 = vst.msk [vmem:[#allocation14 + $0x5] sm:$0x1] %vm774_vm13, %v1303_v26 }
 0x80f   :  { %1319 = vst.msk [vmem:[#allocation14 + $0x7] sm:$0x1] %vm774_vm13, %v1304_v29 }
 0x810   :  { %1320 = vst.msk [vmem:[#allocation14 + $0x9] sm:$0x1] %vm774_vm13, %v1305_v31 }
 0x811   :  { %1321 = vst.msk [vmem:[#allocation14 + $0xb] sm:$0x1] %vm774_vm13, %v1306_v32 }
 0x812   :  { %1322 = vst.msk [vmem:[#allocation14 + $0xd] sm:$0x1] %vm774_vm13, %v1307_v33 }
 0x813   :  { %1323 = vst.msk [vmem:[#allocation14 + $0xf] sm:$0x1] %vm774_vm13, %v1308_v34 }
 0x814   :  { %1336 = dma.vmem_to_hbm [thread:$0]  %s1329_s13, 256, %s1331_s20, [#allocation4], %s1753_s16, %s1753_s16, %s1754_s17  }
 0x815   :  { %1748 = dma.done.wait [#allocation4], 256  }
 0x816   :  { %1749 = vsyncadd [#allocation4], 4294967040 }
 0x817   :  { %1750 = dma.done.wait [#allocation16], 1280  }
 0x818   :  { %1751 = vsyncadd [#allocation16], 4294966016 }
 0x819   :  { %1375 = vsyncpa [#allocation3], 1 }
 0x81a   :  { %1376 = vsyncpa [#allocation6], 1 }
 0x81b   :  { %1377 = vsyncpa [#allocation9], 1 }
 0x81c   :  { %1378 = vsyncpa [#allocation12], 1 }
 0x81d   :  { %1379 = vsyncpa [#allocation4], 1 }
 0x81e   :  { %1380 = vsyncpa [#allocation16], 1 }

</bundles_post_ra>
